<compile_context>
chip_gen: v5e
topology: v5e:2x2
jax: 0.10.0
libtpu: 0.0.40
codegen_flags: <defaults>
</compile_context>

<pallas_src>
import jax
import jax.numpy as jnp
from jax.experimental import pallas as pl
from jax.experimental.pallas import tpu as pltpu

MIP = 8        # hidden width "mip" hard-coded in the PyTorch module
BN_EPS = 1e-5  # torch.nn.BatchNorm2d default eps


# --------------------------------------------------------------------------
# Small in-kernel helpers (all operate on f32 VMEM values).
# --------------------------------------------------------------------------
def _dot(a, b):
    return jnp.dot(a, b, preferred_element_type=jnp.float32,
                   precision=jax.lax.Precision.HIGHEST)


def _h_swish(y):
    return y * (jnp.clip(y + 3.0, 0.0, 6.0) * (1.0 / 6.0))


def _sigmoid(y):
    return 1.0 / (1.0 + jnp.exp(-y))


def _gates(pooled_h, pooled_w, w1, b1, w2, b2, w3, b3):
    """pooled_h: (C, H), pooled_w: (C, W) f32 -> a_h (C, H), a_w (C, W)."""
    yh = _h_swish(_dot(w1, pooled_h) + b1)   # conv1 + folded BN + h_swish
    yw = _h_swish(_dot(w1, pooled_w) + b1)
    a_h = _sigmoid(_dot(w2, yh) + b2)        # conv2 -> sigmoid   (C, H)
    a_w = _sigmoid(_dot(w3, yw) + b3)        # conv3 -> sigmoid   (C, W)
    return a_h, a_w


# --------------------------------------------------------------------------
# Kernels.
# --------------------------------------------------------------------------
def _fused_kernel(x_ref, ph_ref, pw_ref, eh_ref, ew_ref,
                  w1_ref, b1_ref, w2_ref, b2_ref, w3_ref, b3_ref, o_ref):
    """Single-pass CoordAtt on one image: x block (1, C, H*W), lane-dense."""
    x = x_ref[0].astype(jnp.float32)              # (C, H*W)
    pooled_h = _dot(x, ph_ref[...])               # (C, H)  mean over W  (MXU)
    pooled_w = _dot(x, pw_ref[...])               # (C, W)  mean over H  (MXU)
    a_h, a_w = _gates(pooled_h, pooled_w, w1_ref[...], b1_ref[...],
                      w2_ref[...], b2_ref[...], w3_ref[...], b3_ref[...])
    gate_h = _dot(a_h, eh_ref[...])               # (C, H*W) broadcast over W
    gate_w = _dot(a_w, ew_ref[...])               # (C, H*W) broadcast over H
    o_ref[0] = (x * gate_h * gate_w).astype(o_ref.dtype)


def _gates_kernel(x_ref, ph_ref, pw_ref,
                  w1_ref, b1_ref, w2_ref, b2_ref, w3_ref, b3_ref,
                  ah_ref, aw_ref, acch_ref, accw_ref):
    """Pass 1 of the chunked fallback: accumulate pooling over H*W chunks."""
    j = pl.program_id(1)

    @pl.when(j == 0)
    def _init():
        acch_ref[...] = jnp.zeros_like(acch_ref)
        accw_ref[...] = jnp.zeros_like(accw_ref)

    x = x_ref[0].astype(jnp.float32)              # (C, SP)
    acch_ref[...] += _dot(x, ph_ref[...])         # (C, H)
    accw_ref[...] += _dot(x, pw_ref[...])         # (C, W)

    @pl.when(j == pl.num_programs(1) - 1)
    def _finish():
        a_h, a_w = _gates(acch_ref[...], accw_ref[...], w1_ref[...], b1_ref[...],
                          w2_ref[...], b2_ref[...], w3_ref[...], b3_ref[...])
        ah_ref[0] = a_h
        aw_ref[0] = a_w


def _apply_gates_kernel(x_ref, ah_ref, aw_ref, eh_ref, ew_ref, o_ref):
    """Pass 2 of the chunked fallback: gate one lane-dense H*W chunk."""
    x = x_ref[0].astype(jnp.float32)              # (C, SP)
    gate_h = _dot(ah_ref[0], eh_ref[...])         # (C, SP)
    gate_w = _dot(aw_ref[0], ew_ref[...])         # (C, SP)
    o_ref[0] = (x * gate_h * gate_w).astype(o_ref.dtype)


# --------------------------------------------------------------------------
# Wrapper / tiling logic.
# --------------------------------------------------------------------------
def _vmem_limit_bytes():
    try:
        cap = int(pltpu.get_tpu_info().vmem_capacity_bytes)
    except Exception:
        cap = 64 << 20  # conservative default: v7x per-TensorCore VMEM
    # ~96 MiB on 128 MiB-class chips (v5e/v6e), ~48 MiB on v7x.
    return max(32 << 20, min((cap * 3) // 4, 96 << 20))


def _step_vmem_bytes(C, H, W, S, in_b, out_b):
    """Rough per-grid-step VMEM footprint when S spatial elems are resident."""
    io = 2 * C * S * (in_b + out_b)        # double-buffered x / out tiles
    mats = 4 * 4 * S * (H + W)             # P_h,P_w,E_h,E_w slabs (f32, x2 buf)
    tmp = 4 * 4 * C * S                    # f32 temporaries (x, gates, slack)
    small = 16 * C * (H + W) + (1 << 16)
    return io + mats + tmp + small


def _pick_spatial_chunk(C, H, W, in_b, out_b, budget):
    """Largest multiple-of-128 divisor of H*W whose step footprint fits."""
    HW = H * W
    if HW % 128 != 0:
        return None
    best = None
    for sp in range(128, HW, 128):
        if HW % sp == 0 and _step_vmem_bytes(C, H, W, sp, in_b, out_b) <= budget:
            best = sp
    return best


def coord_att(x, w1, b1, bn_gamma, bn_beta, bn_mean, bn_var, w2, b2, w3, b3,
              *, force_spatial_chunk=None):
    """CoordAtt forward (inp == oup == C), inference-mode BatchNorm.

    x  : (N, C, H, W) (f32 or bf16; output keeps x.dtype)
    w1 : (MIP, C, 1, 1), b1 : (MIP,)
    bn_*: (MIP,) BatchNorm2d params / running stats
    w2, w3 : (C, MIP, 1, 1), b2, b3 : (C,)
    """
    N, C, H, W = x.shape
    HW = H * W
    assert w1.shape == (MIP, C, 1, 1)
    assert w2.shape == (C, MIP, 1, 1) and w3.shape == (C, MIP, 1, 1)

    f32 = jnp.float32
    # Fold BatchNorm (inference) into conv1's weight/bias.
    s = (bn_gamma.astype(f32) / jnp.sqrt(bn_var.astype(f32) + BN_EPS))
    w1e = w1[:, :, 0, 0].astype(f32) * s[:, None]                        # (MIP, C)
    b1e = ((b1.astype(f32) - bn_mean.astype(f32)) * s
           + bn_beta.astype(f32)).reshape(MIP, 1)                        # (MIP, 1)
    w2e = w2[:, :, 0, 0].astype(f32)                                     # (C, MIP)
    b2e = b2.astype(f32).reshape(C, 1)
    w3e = w3[:, :, 0, 0].astype(f32)                                     # (C, MIP)
    b3e = b3.astype(f32).reshape(C, 1)

    # Constant pooling / expansion matrices (0/1-valued).
    row = jnp.arange(HW, dtype=jnp.int32) // W
    col = jnp.arange(HW, dtype=jnp.int32) % W
    p_h = (row[:, None] == jnp.arange(H)[None, :]).astype(f32) * (1.0 / W)  # (HW, H)
    p_w = (col[:, None] == jnp.arange(W)[None, :]).astype(f32) * (1.0 / H)  # (HW, W)
    e_h = (row[None, :] == jnp.arange(H)[:, None]).astype(f32)              # (H, HW)
    e_w = (col[None, :] == jnp.arange(W)[:, None]).astype(f32)              # (W, HW)

    x_flat = x.reshape(N, C, HW)  # free: NCHW is row-major over (H, W)
    in_b = x.dtype.itemsize
    out_b = in_b

    vmem_limit = _vmem_limit_bytes()
    budget = (vmem_limit * 4) // 5

    chunk = force_spatial_chunk
    if chunk is not None:
        assert HW % chunk == 0 and chunk % 128 == 0
    elif _step_vmem_bytes(C, H, W, HW, in_b, out_b) > budget:
        chunk = _pick_spatial_chunk(C, H, W, in_b, out_b, budget)
        # TODO(synk): if H*W is not a multiple of 128 and a single image still
        # overflows VMEM we fall through to the fused path as a best effort.

    params = (w1e, b1e, w2e, b2e, w3e, b3e)
    param_specs_1d = [  # full (tiny) 2-D blocks, constant index
        pl.BlockSpec((MIP, C), lambda n: (0, 0)),
        pl.BlockSpec((MIP, 1), lambda n: (0, 0)),
        pl.BlockSpec((C, MIP), lambda n: (0, 0)),
        pl.BlockSpec((C, 1), lambda n: (0, 0)),
        pl.BlockSpec((C, MIP), lambda n: (0, 0)),
        pl.BlockSpec((C, 1), lambda n: (0, 0)),
    ]
    param_specs_2d = [
        pl.BlockSpec((MIP, C), lambda n, j: (0, 0)),
        pl.BlockSpec((MIP, 1), lambda n, j: (0, 0)),
        pl.BlockSpec((C, MIP), lambda n, j: (0, 0)),
        pl.BlockSpec((C, 1), lambda n, j: (0, 0)),
        pl.BlockSpec((C, MIP), lambda n, j: (0, 0)),
        pl.BlockSpec((C, 1), lambda n, j: (0, 0)),
    ]

    if chunk is None:
        # ---------------- fused single-pass path: grid over batch ----------
        cost = pl.CostEstimate(
            flops=int(4 * N * C * HW * (H + W) + 5 * N * C * HW),
            transcendentals=int(N * C * (H + W)),
            bytes_accessed=int(N * C * HW * (in_b + out_b)
                               + 8 * HW * (H + W)),
        )
        out_flat = pl.pallas_call(
            _fused_kernel,
            out_shape=jax.ShapeDtypeStruct((N, C, HW), x.dtype),
            grid_spec=pltpu.PrefetchScalarGridSpec(
                num_scalar_prefetch=0,
                grid=(N,),
                in_specs=[
                    pl.BlockSpec((1, C, HW), lambda n: (n, 0, 0)),
                    pl.BlockSpec((HW, H), lambda n: (0, 0)),
                    pl.BlockSpec((HW, W), lambda n: (0, 0)),
                    pl.BlockSpec((H, HW), lambda n: (0, 0)),
                    pl.BlockSpec((W, HW), lambda n: (0, 0)),
                ] + param_specs_1d,
                out_specs=pl.BlockSpec((1, C, HW), lambda n: (n, 0, 0)),
            ),
            compiler_params=pltpu.CompilerParams(
                dimension_semantics=("parallel",),
                vmem_limit_bytes=vmem_limit,
            ),
            cost_estimate=cost,
        )(x_flat, p_h, p_w, e_h, e_w, *params)
        return out_flat.reshape(N, C, H, W)

    # ---------------- chunked two-pass fallback -----------------------------
    sp = chunk
    n_sp = HW // sp

    a_h, a_w = pl.pallas_call(
        _gates_kernel,
        out_shape=(jax.ShapeDtypeStruct((N, C, H), jnp.float32),
                   jax.ShapeDtypeStruct((N, C, W), jnp.float32)),
        grid_spec=pltpu.PrefetchScalarGridSpec(
            num_scalar_prefetch=0,
            grid=(N, n_sp),
            in_specs=[
                pl.BlockSpec((1, C, sp), lambda n, j: (n, 0, j)),
                pl.BlockSpec((sp, H), lambda n, j: (j, 0)),
                pl.BlockSpec((sp, W), lambda n, j: (j, 0)),
            ] + param_specs_2d,
            out_specs=[
                pl.BlockSpec((1, C, H), lambda n, j: (n, 0, 0)),
                pl.BlockSpec((1, C, W), lambda n, j: (n, 0, 0)),
            ],
            scratch_shapes=[pltpu.VMEM((C, H), jnp.float32),
                            pltpu.VMEM((C, W), jnp.float32)],
        ),
        compiler_params=pltpu.CompilerParams(
            dimension_semantics=("parallel", "arbitrary"),
            vmem_limit_bytes=vmem_limit,
        ),
    )(x_flat, p_h, p_w, *params)

    out_flat = pl.pallas_call(
        _apply_gates_kernel,
        out_shape=jax.ShapeDtypeStruct((N, C, HW), x.dtype),
        grid_spec=pltpu.PrefetchScalarGridSpec(
            num_scalar_prefetch=0,
            grid=(N, n_sp),
            in_specs=[
                pl.BlockSpec((1, C, sp), lambda n, j: (n, 0, j)),
                pl.BlockSpec((1, C, H), lambda n, j: (n, 0, 0)),
                pl.BlockSpec((1, C, W), lambda n, j: (n, 0, 0)),
                pl.BlockSpec((H, sp), lambda n, j: (0, j)),
                pl.BlockSpec((W, sp), lambda n, j: (0, j)),
            ],
            out_specs=pl.BlockSpec((1, C, sp), lambda n, j: (n, 0, j)),
        ),
        compiler_params=pltpu.CompilerParams(
            dimension_semantics=("parallel", "parallel"),
            vmem_limit_bytes=vmem_limit,
        ),
    )(x_flat, a_h, a_w, e_h, e_w)
    return out_flat.reshape(N, C, H, W)


# --------------------------------------------------------------------------
# Pure-JAX reference (mirrors the PyTorch CoordAtt forward, eval-mode BN).
# --------------------------------------------------------------------------
def coord_att_ref(x, w1, b1, gamma, beta, mean, var, w2, b2, w3, b3):
    n, c, h, w = x.shape
    x_h = jnp.mean(x, axis=3, keepdims=True)                    # (n,c,h,1)
    x_w = jnp.mean(x, axis=2, keepdims=True)                    # (n,c,1,w)
    x_w = jnp.transpose(x_w, (0, 1, 3, 2))                      # (n,c,w,1)
    y = jnp.concatenate([x_h, x_w], axis=2)                     # (n,c,h+w,1)
    y = jnp.einsum('oc,nchw->nohw', w1[:, :, 0, 0], y) + b1[None, :, None, None]
    scale = gamma / jnp.sqrt(var + BN_EPS)
    y = (y - mean[None, :, None, None]) * scale[None, :, None, None] + beta[None, :, None, None]
    y = y * jnp.clip(y + 3.0, 0.0, 6.0) / 6.0                   # h_swish
    yh, yw = y[:, :, :h, :], y[:, :, h:, :]
    yw = jnp.transpose(yw, (0, 1, 3, 2))
    a_h = jax.nn.sigmoid(jnp.einsum('om,nmhw->nohw', w2[:, :, 0, 0], yh) + b2[None, :, None, None])
    a_w = jax.nn.sigmoid(jnp.einsum('om,nmhw->nohw', w3[:, :, 0, 0], yw) + b3[None, :, None, None])
    return x * a_w * a_h


if __name__ == "__main__":
    key = jax.random.PRNGKey(0)
    ks = jax.random.split(key, 11)

    N, C, H, W = 2, 4, 16, 16   # inp == oup == 4

    x = jax.random.normal(ks[0], (N, C, H, W), dtype=jnp.float32)
    w1 = 0.3 * jax.random.normal(ks[1], (MIP, C, 1, 1), dtype=jnp.float32)
    b1 = 0.1 * jax.random.normal(ks[2], (MIP,), dtype=jnp.float32)
    bn_gamma = 1.0 + 0.1 * jax.random.normal(ks[3], (MIP,), dtype=jnp.float32)
    bn_beta = 0.1 * jax.random.normal(ks[4], (MIP,), dtype=jnp.float32)
    bn_mean = 0.1 * jax.random.normal(ks[5], (MIP,), dtype=jnp.float32)
    bn_var = jnp.abs(jax.random.normal(ks[6], (MIP,), dtype=jnp.float32)) + 0.5
    w2 = 0.3 * jax.random.normal(ks[7], (C, MIP, 1, 1), dtype=jnp.float32)
    b2 = 0.1 * jax.random.normal(ks[8], (C,), dtype=jnp.float32)
    w3 = 0.3 * jax.random.normal(ks[9], (C, MIP, 1, 1), dtype=jnp.float32)
    b3 = 0.1 * jax.random.normal(ks[10], (C,), dtype=jnp.float32)

    args = (w1, b1, bn_gamma, bn_beta, bn_mean, bn_var, w2, b2, w3, b3)
    ref = coord_att_ref(x, *args)

    # Main fused single-pass path.
    out = jax.block_until_ready(coord_att(x, *args))
    assert out.shape == (N, C, H, W) and out.dtype == x.dtype
    assert jnp.allclose(out, ref, atol=1e-3, rtol=1e-2), \
        float(jnp.max(jnp.abs(out - ref)))

    # Spatially-chunked fallback path (used when one image overflows VMEM).
    out_chunked = jax.block_until_ready(coord_att(x, *args, force_spatial_chunk=128))
    assert jnp.allclose(out_chunked, ref, atol=1e-3, rtol=1e-2), \
        float(jnp.max(jnp.abs(out_chunked - ref)))

    # Native bf16 I/O: output keeps the input dtype, no wrapper-side casts.
    x_bf16 = x.astype(jnp.bfloat16)
    out_bf16 = jax.block_until_ready(coord_att(x_bf16, *args))
    assert out_bf16.dtype == jnp.bfloat16
    ref_bf16 = coord_att_ref(x_bf16.astype(jnp.float32), *args)
    assert jnp.allclose(out_bf16.astype(jnp.float32), ref_bf16, atol=5e-2, rtol=5e-2)

    print("KERNEL_OK")
</pallas_src>

<mosaic_0001>
module attributes {stable_mosaic.version = 11 : i64} {
  func.func @_fused_kernel(%arg0: i32, %arg1: memref<1x4x256xf32, #tpu.memory_space<vmem>>, %arg2: memref<256x16xf32, #tpu.memory_space<vmem>>, %arg3: memref<256x16xf32, #tpu.memory_space<vmem>>, %arg4: memref<16x256xf32, #tpu.memory_space<vmem>>, %arg5: memref<16x256xf32, #tpu.memory_space<vmem>>, %arg6: memref<8x4xf32, #tpu.memory_space<vmem>>, %arg7: memref<8x1xf32, #tpu.memory_space<vmem>>, %arg8: memref<4x8xf32, #tpu.memory_space<vmem>>, %arg9: memref<4x1xf32, #tpu.memory_space<vmem>>, %arg10: memref<4x8xf32, #tpu.memory_space<vmem>>, %arg11: memref<4x1xf32, #tpu.memory_space<vmem>>, %arg12: memref<1x4x256xf32, #tpu.memory_space<vmem>>) attributes {dimension_semantics = [#tpu.dimension_semantics<parallel>], iteration_bounds = array<i64: 2>, scalar_prefetch = 0 : i64, scratch_operands = 0 : i64, tpu.core_type = #tpu.core_type<tc>, window_params = [{transform_indices = @transform_0, window_bounds = array<i64: 1, 4, 256>}, {pipeline_mode = #tpu.pipeline_mode<synchronous>, transform_indices = @transform_1, window_bounds = array<i64: 256, 16>}, {pipeline_mode = #tpu.pipeline_mode<synchronous>, transform_indices = @transform_2, window_bounds = array<i64: 256, 16>}, {pipeline_mode = #tpu.pipeline_mode<synchronous>, transform_indices = @transform_3, window_bounds = array<i64: 16, 256>}, {pipeline_mode = #tpu.pipeline_mode<synchronous>, transform_indices = @transform_4, window_bounds = array<i64: 16, 256>}, {pipeline_mode = #tpu.pipeline_mode<synchronous>, transform_indices = @transform_5, window_bounds = array<i64: 8, 4>}, {pipeline_mode = #tpu.pipeline_mode<synchronous>, transform_indices = @transform_6, window_bounds = array<i64: 8, 1>}, {pipeline_mode = #tpu.pipeline_mode<synchronous>, transform_indices = @transform_7, window_bounds = array<i64: 4, 8>}, {pipeline_mode = #tpu.pipeline_mode<synchronous>, transform_indices = @transform_8, window_bounds = array<i64: 4, 1>}, {pipeline_mode = #tpu.pipeline_mode<synchronous>, transform_indices = @transform_9, window_bounds = array<i64: 4, 8>}, {pipeline_mode = #tpu.pipeline_mode<synchronous>, transform_indices = @transform_10, window_bounds = array<i64: 4, 1>}, {transform_indices = @transform_11, window_bounds = array<i64: 1, 4, 256>}]} {
    %c0 = arith.constant 0 : index
    %c0_0 = arith.constant 0 : index
    %c0_1 = arith.constant 0 : index
    %0 = vector.load %arg1[%c0, %c0_0, %c0_1] : memref<1x4x256xf32, #tpu.memory_space<vmem>>, vector<1x4x256xf32>
    %1 = vector.shape_cast %0 : vector<1x4x256xf32> to vector<4x256xf32>
    %c0_2 = arith.constant 0 : index
    %c0_3 = arith.constant 0 : index
    %2 = vector.load %arg2[%c0_2, %c0_3] : memref<256x16xf32, #tpu.memory_space<vmem>>, vector<256x16xf32>
    %cst = arith.constant dense<0.000000e+00> : vector<4x16xf32>
    %3 = tpu.matmul %1, %2, %cst {dimension_numbers = #tpu.dot_dimension_numbers<[1], [0], [0], [1], [0, 0, 1, 1], [], []>, precision = #tpu.contract_precision<fp32>} : vector<4x256xf32>, vector<256x16xf32>, vector<4x16xf32> -> vector<4x16xf32>
    %c0_4 = arith.constant 0 : index
    %c0_5 = arith.constant 0 : index
    %4 = vector.load %arg3[%c0_4, %c0_5] : memref<256x16xf32, #tpu.memory_space<vmem>>, vector<256x16xf32>
    %cst_6 = arith.constant dense<0.000000e+00> : vector<4x16xf32>
    %5 = tpu.matmul %1, %4, %cst_6 {dimension_numbers = #tpu.dot_dimension_numbers<[1], [0], [0], [1], [0, 0, 1, 1], [], []>, precision = #tpu.contract_precision<fp32>} : vector<4x256xf32>, vector<256x16xf32>, vector<4x16xf32> -> vector<4x16xf32>
    %c0_7 = arith.constant 0 : index
    %c0_8 = arith.constant 0 : index
    %6 = vector.load %arg6[%c0_7, %c0_8] : memref<8x4xf32, #tpu.memory_space<vmem>>, vector<8x4xf32>
    %c0_9 = arith.constant 0 : index
    %c0_10 = arith.constant 0 : index
    %7 = vector.load %arg7[%c0_9, %c0_10] : memref<8x1xf32, #tpu.memory_space<vmem>>, vector<8x1xf32>
    %c0_11 = arith.constant 0 : index
    %c0_12 = arith.constant 0 : index
    %8 = vector.load %arg8[%c0_11, %c0_12] : memref<4x8xf32, #tpu.memory_space<vmem>>, vector<4x8xf32>
    %c0_13 = arith.constant 0 : index
    %c0_14 = arith.constant 0 : index
    %9 = vector.load %arg9[%c0_13, %c0_14] : memref<4x1xf32, #tpu.memory_space<vmem>>, vector<4x1xf32>
    %c0_15 = arith.constant 0 : index
    %c0_16 = arith.constant 0 : index
    %10 = vector.load %arg10[%c0_15, %c0_16] : memref<4x8xf32, #tpu.memory_space<vmem>>, vector<4x8xf32>
    %c0_17 = arith.constant 0 : index
    %c0_18 = arith.constant 0 : index
    %11 = vector.load %arg11[%c0_17, %c0_18] : memref<4x1xf32, #tpu.memory_space<vmem>>, vector<4x1xf32>
    %cst_19 = arith.constant dense<0.000000e+00> : vector<8x16xf32>
    %12 = tpu.matmul %6, %3, %cst_19 {dimension_numbers = #tpu.dot_dimension_numbers<[1], [0], [0], [1], [0, 0, 1, 1], [], []>, precision = #tpu.contract_precision<fp32>} : vector<8x4xf32>, vector<4x16xf32>, vector<8x16xf32> -> vector<8x16xf32>
    %13 = vector.broadcast %7 : vector<8x1xf32> to vector<8x16xf32>
    %14 = arith.addf %12, %13 : vector<8x16xf32>
    %cst_20 = arith.constant 3.000000e+00 : f32
    %15 = vector.broadcast %cst_20 : f32 to vector<8x16xf32>
    %16 = arith.addf %14, %15 : vector<8x16xf32>
    %cst_21 = arith.constant 0.000000e+00 : f32
    %cst_22 = arith.constant 6.000000e+00 : f32
    %17 = vector.broadcast %cst_21 : f32 to vector<8x16xf32>
    %18 = arith.maximumf %17, %16 : vector<8x16xf32>
    %19 = vector.broadcast %cst_22 : f32 to vector<8x16xf32>
    %20 = arith.minimumf %19, %18 : vector<8x16xf32>
    %cst_23 = arith.constant 0.166666672 : f32
    %21 = vector.broadcast %cst_23 : f32 to vector<8x16xf32>
    %22 = arith.mulf %20, %21 : vector<8x16xf32>
    %23 = arith.mulf %14, %22 : vector<8x16xf32>
    %cst_24 = arith.constant dense<0.000000e+00> : vector<8x16xf32>
    %24 = tpu.matmul %6, %5, %cst_24 {dimension_numbers = #tpu.dot_dimension_numbers<[1], [0], [0], [1], [0, 0, 1, 1], [], []>, precision = #tpu.contract_precision<fp32>} : vector<8x4xf32>, vector<4x16xf32>, vector<8x16xf32> -> vector<8x16xf32>
    %25 = vector.broadcast %7 : vector<8x1xf32> to vector<8x16xf32>
    %26 = arith.addf %24, %25 : vector<8x16xf32>
    %cst_25 = arith.constant 3.000000e+00 : f32
    %27 = vector.broadcast %cst_25 : f32 to vector<8x16xf32>
    %28 = arith.addf %26, %27 : vector<8x16xf32>
    %cst_26 = arith.constant 0.000000e+00 : f32
    %cst_27 = arith.constant 6.000000e+00 : f32
    %29 = vector.broadcast %cst_26 : f32 to vector<8x16xf32>
    %30 = arith.maximumf %29, %28 : vector<8x16xf32>
    %31 = vector.broadcast %cst_27 : f32 to vector<8x16xf32>
    %32 = arith.minimumf %31, %30 : vector<8x16xf32>
    %cst_28 = arith.constant 0.166666672 : f32
    %33 = vector.broadcast %cst_28 : f32 to vector<8x16xf32>
    %34 = arith.mulf %32, %33 : vector<8x16xf32>
    %35 = arith.mulf %26, %34 : vector<8x16xf32>
    %cst_29 = arith.constant dense<0.000000e+00> : vector<4x16xf32>
    %36 = tpu.matmul %8, %23, %cst_29 {dimension_numbers = #tpu.dot_dimension_numbers<[1], [0], [0], [1], [0, 0, 1, 1], [], []>, precision = #tpu.contract_precision<fp32>} : vector<4x8xf32>, vector<8x16xf32>, vector<4x16xf32> -> vector<4x16xf32>
    %37 = vector.broadcast %9 : vector<4x1xf32> to vector<4x16xf32>
    %38 = arith.addf %36, %37 : vector<4x16xf32>
    %cst_30 = arith.constant 0.000000e+00 : f32
    %39 = vector.broadcast %cst_30 : f32 to vector<4x16xf32>
    %40 = arith.subf %39, %38 : vector<4x16xf32>
    %41 = math.exp %40 : vector<4x16xf32>
    %cst_31 = arith.constant 1.000000e+00 : f32
    %42 = vector.broadcast %cst_31 : f32 to vector<4x16xf32>
    %43 = arith.addf %42, %41 : vector<4x16xf32>
    %cst_32 = arith.constant 1.000000e+00 : f32
    %44 = vector.broadcast %cst_32 : f32 to vector<4x16xf32>
    %45 = arith.divf %44, %43 : vector<4x16xf32>
    %cst_33 = arith.constant dense<0.000000e+00> : vector<4x16xf32>
    %46 = tpu.matmul %10, %35, %cst_33 {dimension_numbers = #tpu.dot_dimension_numbers<[1], [0], [0], [1], [0, 0, 1, 1], [], []>, precision = #tpu.contract_precision<fp32>} : vector<4x8xf32>, vector<8x16xf32>, vector<4x16xf32> -> vector<4x16xf32>
    %47 = vector.broadcast %11 : vector<4x1xf32> to vector<4x16xf32>
    %48 = arith.addf %46, %47 : vector<4x16xf32>
    %cst_34 = arith.constant 0.000000e+00 : f32
    %49 = vector.broadcast %cst_34 : f32 to vector<4x16xf32>
    %50 = arith.subf %49, %48 : vector<4x16xf32>
    %51 = math.exp %50 : vector<4x16xf32>
    %cst_35 = arith.constant 1.000000e+00 : f32
    %52 = vector.broadcast %cst_35 : f32 to vector<4x16xf32>
    %53 = arith.addf %52, %51 : vector<4x16xf32>
    %cst_36 = arith.constant 1.000000e+00 : f32
    %54 = vector.broadcast %cst_36 : f32 to vector<4x16xf32>
    %55 = arith.divf %54, %53 : vector<4x16xf32>
    %c0_37 = arith.constant 0 : index
    %c0_38 = arith.constant 0 : index
    %56 = vector.load %arg4[%c0_37, %c0_38] : memref<16x256xf32, #tpu.memory_space<vmem>>, vector<16x256xf32>
    %cst_39 = arith.constant dense<0.000000e+00> : vector<4x256xf32>
    %57 = tpu.matmul %45, %56, %cst_39 {dimension_numbers = #tpu.dot_dimension_numbers<[1], [0], [0], [1], [0, 0, 1, 1], [], []>, precision = #tpu.contract_precision<fp32>} : vector<4x16xf32>, vector<16x256xf32>, vector<4x256xf32> -> vector<4x256xf32>
    %c0_40 = arith.constant 0 : index
    %c0_41 = arith.constant 0 : index
    %58 = vector.load %arg5[%c0_40, %c0_41] : memref<16x256xf32, #tpu.memory_space<vmem>>, vector<16x256xf32>
    %cst_42 = arith.constant dense<0.000000e+00> : vector<4x256xf32>
    %59 = tpu.matmul %55, %58, %cst_42 {dimension_numbers = #tpu.dot_dimension_numbers<[1], [0], [0], [1], [0, 0, 1, 1], [], []>, precision = #tpu.contract_precision<fp32>} : vector<4x16xf32>, vector<16x256xf32>, vector<4x256xf32> -> vector<4x256xf32>
    %60 = arith.mulf %1, %57 : vector<4x256xf32>
    %61 = arith.mulf %60, %59 : vector<4x256xf32>
    %c0_43 = arith.constant 0 : index
    %c0_44 = arith.constant 0 : index
    %c0_45 = arith.constant 0 : index
    %62 = vector.load %arg12[%c0_43, %c0_44, %c0_45] : memref<1x4x256xf32, #tpu.memory_space<vmem>>, vector<1x4x256xf32>
    %63 = vector.shape_cast %62 : vector<1x4x256xf32> to vector<4x256xf32>
    %64 = vector.shape_cast %61 : vector<4x256xf32> to vector<1x4x256xf32>
    tpu.vector_store %arg12[%c0_43, %c0_44, %c0_45], %64 {strides = array<i32>} : memref<1x4x256xf32, #tpu.memory_space<vmem>>, vector<1x4x256xf32>,
    return
  }
  func.func @transform_0(%arg0: i32) -> (i32, i32, i32) {
    %c0_i32 = arith.constant 0 : i32
    %c0_i32_0 = arith.constant 0 : i32
    %c0_i32_1 = arith.constant 0 : i32
    return %arg0, %c0_i32, %c0_i32_0 : i32, i32, i32
  }
  func.func @transform_1(%arg0: i32) -> (i32, i32) {
    %c0_i32 = arith.constant 0 : i32
    %c0_i32_0 = arith.constant 0 : i32
    %c0_i32_1 = arith.constant 0 : i32
    return %c0_i32, %c0_i32_0 : i32, i32
  }
  func.func @transform_2(%arg0: i32) -> (i32, i32) {
    %c0_i32 = arith.constant 0 : i32
    %c0_i32_0 = arith.constant 0 : i32
    %c0_i32_1 = arith.constant 0 : i32
    return %c0_i32, %c0_i32_0 : i32, i32
  }
  func.func @transform_3(%arg0: i32) -> (i32, i32) {
    %c0_i32 = arith.constant 0 : i32
    %c0_i32_0 = arith.constant 0 : i32
    %c0_i32_1 = arith.constant 0 : i32
    return %c0_i32, %c0_i32_0 : i32, i32
  }
  func.func @transform_4(%arg0: i32) -> (i32, i32) {
    %c0_i32 = arith.constant 0 : i32
    %c0_i32_0 = arith.constant 0 : i32
    %c0_i32_1 = arith.constant 0 : i32
    return %c0_i32, %c0_i32_0 : i32, i32
  }
  func.func @transform_5(%arg0: i32) -> (i32, i32) {
    %c0_i32 = arith.constant 0 : i32
    %c0_i32_0 = arith.constant 0 : i32
    %c0_i32_1 = arith.constant 0 : i32
    return %c0_i32, %c0_i32_0 : i32, i32
  }
  func.func @transform_6(%arg0: i32) -> (i32, i32) {
    %c0_i32 = arith.constant 0 : i32
    %c0_i32_0 = arith.constant 0 : i32
    %c0_i32_1 = arith.constant 0 : i32
    return %c0_i32, %c0_i32_0 : i32, i32
  }
  func.func @transform_7(%arg0: i32) -> (i32, i32) {
    %c0_i32 = arith.constant 0 : i32
    %c0_i32_0 = arith.constant 0 : i32
    %c0_i32_1 = arith.constant 0 : i32
    return %c0_i32, %c0_i32_0 : i32, i32
  }
  func.func @transform_8(%arg0: i32) -> (i32, i32) {
    %c0_i32 = arith.constant 0 : i32
    %c0_i32_0 = arith.constant 0 : i32
    %c0_i32_1 = arith.constant 0 : i32
    return %c0_i32, %c0_i32_0 : i32, i32
  }
  func.func @transform_9(%arg0: i32) -> (i32, i32) {
    %c0_i32 = arith.constant 0 : i32
    %c0_i32_0 = arith.constant 0 : i32
    %c0_i32_1 = arith.constant 0 : i32
    return %c0_i32, %c0_i32_0 : i32, i32
  }
  func.func @transform_10(%arg0: i32) -> (i32, i32) {
    %c0_i32 = arith.constant 0 : i32
    %c0_i32_0 = arith.constant 0 : i32
    %c0_i32_1 = arith.constant 0 : i32
    return %c0_i32, %c0_i32_0 : i32, i32
  }
  func.func @transform_11(%arg0: i32) -> (i32, i32, i32) {
    %c0_i32 = arith.constant 0 : i32
    %c0_i32_0 = arith.constant 0 : i32
    %c0_i32_1 = arith.constant 0 : i32
    return %arg0, %c0_i32, %c0_i32_0 : i32, i32, i32
  }
}

</mosaic_0001>

<bundles_post_ra>
// kernel: tpu_custom_call.1
= control target key start
LH: loop header
LB: loop body
LE: loop exit
PB: predicated region body
PF: predicated region fallthrough
CT: control target
= control target key end

     0   :  { %s4797_s0 = inlined_call_operand.vmem [shape: f32[2,4,256], index: 0, kind: input, shape index: {}]   ;;  %s4798_s1 = inlined_call_operand.vmem [shape: f32[256,16], index: 1, kind: input, shape index: {}]   ;;  %s4799_s2 = inlined_call_operand.vmem [shape: f32[256,16], index: 2, kind: input, shape index: {}]   ;;  %s4800_s3 = inlined_call_operand.vmem [shape: f32[16,256], index: 3, kind: input, shape index: {}]   ;;  %s4801_s4 = inlined_call_operand.vmem [shape: f32[16,256], index: 4, kind: input, shape index: {}]   ;;  %s4802_s5 = inlined_call_operand.vmem [shape: f32[8,4], index: 5, kind: input, shape index: {}]   ;;  %s4803_s6 = inlined_call_operand.vmem [shape: f32[8,1], index: 6, kind: input, shape index: {}]   ;;  %s4804_s7 = inlined_call_operand.vmem [shape: f32[4,8], index: 7, kind: input, shape index: {}]   ;;  %s4805_s8 = inlined_call_operand.vmem [shape: f32[4,1], index: 8, kind: input, shape index: {}]   ;;  %s4806_s9 = inlined_call_operand.vmem [shape: f32[4,8], index: 9, kind: input, shape index: {}]   ;;  %s4807_s10 = inlined_call_operand.vmem [shape: f32[4,1], index: 10, kind: input, shape index: {}]   ;;  %s4808_s11 = inlined_call_operand.hbm [shape: f32[2,4,256], index: 11, kind: output, shape index: {}]  }
   0x1   :  { %4852 = sst [smem:[#allocation8_spill]] %s4797_s0 }
   0x2   :  { %16 = vsyncpa [#allocation3], 0 }
   0x3   :  { %18 = vsyncpa [#allocation3 + $0x1], 0  ;;  %s3425_s17 = smov 0   ;;  %s3427_s18 = smov 0  }
   0x4   :  { %s3429_s19 = smov 0   ;;  %s3431_s20 = smov 0  }
   0x5 LB: > { %s3446_s21 = sadd.s32 4294967295, %s3362_s20   ;;  %s3236_s22 = sadd.s32 4294967294, %s3362_s20   ;;  %s3362_s20 = sphi %s3431_s20, %s4917_s20   ;;  %s3358_s19 = sphi %s3429_s19, %s4916_s19   ;;  %s3354_s18 = sphi %s3427_s18, %s4915_s18   ;;  %s3350_s17 = sphi %s3425_s17, %s4914_s17  }
   0x6   : > { %s3450_s23 = sadd.s32 1, %s3362_s20   ;;  %s267_s24 = sadd.s32 1, %s3358_s19 }
   0x7   : > { %s264_s25 = ssub.s32 %s3362_s20, %s3450_s23  ;;  %p277_p0 = scmp.ne.s32.totalorder %s3358_s19, %s3354_s18 }
   0x8   : > { %p265_p1 = scmp.eq.s32.totalorder %s264_s25, 0  ;;  %p278_p2 = scmp.eq.s32.totalorder %s3446_s21, 1 }
   0x9   : > { %p283_p3 = scmp.ne.s32.totalorder %s3354_s18, %s3350_s17  ;;  %p284_p4 = scmp.eq.s32.totalorder %s3236_s22, 1 }
   0xa   : > { %s3461_s26 = scalar_select %p265_p1, %s3358_s19, %s267_s24  }
   0xb   : > { %p3463_p5 = por %p278_p2, %p277_p0  ;;  %p3467_p6 = por %p284_p4, %p283_p3 }
   0xc   : > { %p3239_p7 = scmp.ge.s32.totalorder %s3362_s20, 1  ;;  %p340_p8 = scmp.lt.s32.totalorder %s3362_s20, 3 }
   0xe   : > { %p341_p9 = pnand %p3239_p7, %p340_p8 }
  0x10   : > { %344 = sbr.rel (%p341_p9) target bundleno = 880 (0x370), region = 64 }
  0x15   : > { %v401_v0 = vld [vmem:[%s4798_s1 + $0x78] sm:$0xff]  ;;  %v400_v1 = vld [vmem:[%s4798_s1 + $0x70] sm:$0xff]  ;;  %v399_v2 = vld [vmem:[%s4798_s1 + $0x68] sm:$0xff]  ;;  %p380_p10 = scmp.lt.s32.totalorder %s3446_s21, 1  ;;  %s4855_s0 = sld [smem:[#allocation8_spill]]  ;;  %vm1836_vm0 = vcmask 31744  }
  0x16   : > { %v3483_v3 = vand.u32 4294901760, %v401_v0  ;;  %v3485_v4 = vand.u32 4294901760, %v400_v1  ;;  %v3487_v5 = vand.u32 4294901760, %v399_v2  ;;  %v398_v6 = vld [vmem:[%s4798_s1 + $0x60] sm:$0xff]  ;;  %v397_v7 = vld [vmem:[%s4798_s1 + $0x58] sm:$0xff]  ;;  %v396_v8 = vld [vmem:[%s4798_s1 + $0x50] sm:$0xff] }
  0x17   : > { %v3498_v9 = vand.u32 4294901760, %v398_v6  ;;  %v3500_v10 = vand.u32 4294901760, %v397_v7  ;;  %v3502_v11 = vand.u32 4294901760, %v396_v8  ;;  %v395_v12 = vld [vmem:[%s4798_s1 + $0x48] sm:$0xff]  ;;  %v394_v13 = vld [vmem:[%s4798_s1 + $0x40] sm:$0xff]  ;;  %v393_v18 = vld [vmem:[%s4798_s1 + $0x38] sm:$0xff] }
  0x18   : > { %425 = vmatpush.msra.mxu0 %v3483_v3  ;;  %v3512_v14 = vsub.f32 %v401_v0, %v3483_v3  ;;  %v3515_v15 = vsub.f32 %v400_v1, %v3485_v4  ;;  %621 = vmatpush.msra.mxu3 %v3483_v3  ;;  %v3519_v16 = vsub.f32 %v399_v2, %v3487_v5  ;;  %v3521_v17 = vand.u32 4294901760, %v395_v12  ;;  %s3538_s24 = scalar_select %p380_p10, %s3446_s21, 1  ;;  %v392_v26 = vld [vmem:[%s4798_s1 + $0x30] sm:$0xff]  ;;  %v391_v34 = vld [vmem:[%s4798_s1 + $0x28] sm:$0xff]  ;;  %v390_v42 = vld [vmem:[%s4798_s1 + $0x20] sm:$0xff] }
  0x19   : > { %v3527_v19 = vsub.f32 %v398_v6, %v3498_v9  ;;  %v3530_v20 = vsub.f32 %v397_v7, %v3500_v10  ;;  %v3533_v21 = vsub.f32 %v396_v8, %v3502_v11  ;;  %v3545_v25 = vand.u32 4294901760, %v394_v13  ;;  %v389_v48 = vld [vmem:[%s4798_s1 + $0x18] sm:$0xff]  ;;  %v388_v54 = vld [vmem:[%s4798_s1 + $0x10] sm:$0xff]  ;;  %v387_v62 = vld [vmem:[%s4798_s1 + $0x8] sm:$0xff]  ;;  %s377_s30 = sand.u32 1, %s3354_s18   ;;  %s3320_s15 = scalar_lea.hbm %s4808_s11, 16 }
  0x1a   : > { %427 = vmatpush.msra.mxu0 %v3485_v4  ;;  %568 = vmatpush.msra.mxu2 %v3512_v14  ;;  %v467_v22 = vand.u32 4294901760, %v3512_v14  ;;  %v4823_v23 = vand.u32 4294901760, %v3515_v15  ;;  %v4821_v24 = vand.u32 4294901760, %v3519_v16  ;;  %v3552_v28 = vand.u32 4294901760, %v393_v18  ;;  %s3248_s13 = sshll.u32 %s3538_s24, 3  ;;  %v417_v60 = vld [vmem:[%s4798_s1 + $0xf8] sm:$0xff] }
  0x1b   : > { %623 = vmatpush.msra.mxu3 %v3485_v4  ;;  %v4819_v27 = vand.u32 4294901760, %v3527_v19  ;;  %v3555_v29 = vsub.f32 %v395_v12, %v3521_v17  ;;  %v4818_v33 = vand.u32 4294901760, %v3530_v20  ;;  %v3573_v35 = vand.u32 4294901760, %v392_v26  ;;  %s384_s24 = scalar_lea.vmem %s4855_s0, %s3248_s13  ;;  %v386_v6 = vld [vmem:[%s4798_s1] sm:$0xff]  ;;  %v416_v7 = vld [vmem:[%s4798_s1 + $0xf0] sm:$0xff]  ;;  %s3240_s12 = sshll.u32 %s377_s30, 3 }
  0x1c   : > { %429 = vmatpush.msra.mxu0 %v3487_v5  ;;  %571 = vmatpush.msra.mxu2 %v3515_v15  ;;  %v468_v30 = vsub.f32 %v3512_v14, %v467_v22  ;;  %v474_v31 = vsub.f32 %v3515_v15, %v4823_v23  ;;  %v480_v32 = vsub.f32 %v3519_v16, %v4821_v24  ;;  %v4816_v36 = vand.u32 4294901760, %v3533_v21  ;;  %v3625_v55 = vld [vmem:[%s384_s24] sm:$0xff]  ;;  %s3249_s13 = sshll.u32 %s3446_s21, 3  ;;  %s379_s22 = scalar_lea.vmem [#allocation2], %s3240_s12 }
  0x1d   : > { %625 = vmatpush.msra.mxu3 %v3487_v5  ;;  %v486_v39 = vsub.f32 %v3527_v19, %v4819_v27  ;;  %v3583_v40 = vsub.f32 %v394_v13, %v3545_v25  ;;  %v3586_v41 = vand.u32 4294901760, %v391_v34  ;;  %v492_v44 = vsub.f32 %v3530_v20, %v4818_v33  ;;  %4856 = vst [vmem:[#allocation5_spill] sm:$0xff] %v3625_v55  ;;  %s3172_s16 = scalar_lea.hbm %s4808_s11, %s3249_s13  ;;  %s3174_s24 = sshll.u32 %s379_s22, 4  ;;  %s3175_s24 = int_to_ptr.vmem [resolvable:$true] %s3174_s24 }
  0x1e   : > { %431 = vmatpush.msra.mxu0 %v3498_v9  ;;  %v469_v37 = vand.u32 4294901760, %v468_v30  ;;  %574 = vmatpush.msra.mxu2 %v3519_v16  ;;  %v475_v38 = vand.u32 4294901760, %v474_v31  ;;  %v481_v43 = vand.u32 4294901760, %v480_v32  ;;  %v4815_v45 = vand.u32 4294901760, %v3555_v29  ;;  %419 = vst [vmem:[#allocation1] ss:$2 sm:$0xff] %v3625_v55 }
  0x1f   : > { %627 = vmatpush.msra.mxu3 %v3498_v9  ;;  %v3597_v46 = vsub.f32 %v393_v18, %v3552_v28  ;;  %v498_v47 = vsub.f32 %v3533_v21, %v4816_v36  ;;  %v487_v49 = vand.u32 4294901760, %v486_v39  ;;  %v3611_v50 = vand.u32 4294901760, %v390_v42  ;;  %v410_v36 = vld [vmem:[%s4798_s1 + $0xc0] sm:$0xff]  ;;  %s3176_s25 = sshll.u32 %s3172_s16, 4  ;;  %s3161_s21 = scalar_lea.sflag [#allocation3], %s377_s30  ;;  %s3177_s25 = int_to_ptr.hbm [resolvable:$true] %s3176_s25 }
  0x20   : > { %433 = vmatpush.msra.mxu0 %v3500_v10  ;;  %470 = vmatpush.msra.mxu1 %v469_v37  ;;  %v4814_v51 = vand.u32 4294901760, %v3583_v40  ;;  %v3615_v52 = vsub.f32 %v392_v26, %v3573_v35  ;;  %v3620_v53 = vsub.f32 %v391_v34, %v3586_v41  ;;  %v493_v56 = vand.u32 4294901760, %v492_v44  ;;  %v415_v34 = vld [vmem:[%s4798_s1 + $0xe8] sm:$0xff]  ;;  %s3314_s29 = sshra.s32 %s3177_s25, 4  ;;  %s3315_s29 = int_to_ptr.hbm [resolvable:$true] %s3314_s29 }
  0x21   : > { %577 = vmatpush.msra.mxu2 %v3527_v19  ;;  %629 = vmatpush.msra.mxu3 %v3500_v10  ;;  %v504_v57 = vsub.f32 %v3555_v29, %v4815_v45  ;;  %v3631_v58 = vand.u32 4294901760, %v389_v48  ;;  %v4812_v59 = vand.u32 4294901760, %v3597_v46  ;;  %v499_v61 = vand.u32 4294901760, %v498_v47  ;;  %v414_v47 = vld [vmem:[%s4798_s1 + $0xe0] sm:$0xff]  ;;  %s3316_s13 = scalar_lea.hbm %s3315_s29, 8  ;;  %p3321_p0 = scmp.lt.s32.totalorder %s3315_s29, %s4808_s11 }
  0x22   : > { %435 = vmatpush.msra.mxu0 %v3502_v11  ;;  %476 = vmatpush.msra.mxu1 %v475_v38  ;;  %v510_v63 = vsub.f32 %v3583_v40, %v4814_v51  ;;  %v3647_v0 = vand.u32 4294901760, %v388_v54  ;;  %v4811_v1 = vand.u32 4294901760, %v3615_v52  ;;  %v3651_v2 = vsub.f32 %v390_v42, %v3611_v50  ;;  %p3317_p11 = scmp.ne.s32.totalorder %s3315_s29, %s3316_s13  ;;  %p3322_p1 = scmp.lt.s32.totalorder %s3320_s15, %s3316_s13 }
  0x23   : > { %580 = vmatpush.msra.mxu2 %v3530_v20  ;;  %631 = vmatpush.msra.mxu3 %v3502_v11  ;;  %v4810_v8 = vand.u32 4294901760, %v3620_v53  ;;  %v3662_v12 = vand.u32 4294901760, %v417_v60  ;;  %v505_v13 = vand.u32 4294901760, %v504_v57  ;;  %v516_v18 = vsub.f32 %v3597_v46, %v4812_v59 }
  0x24   : > { %437 = vmatpush.msra.mxu0 %v3521_v17  ;;  %482 = vmatpush.msra.mxu1 %v481_v43  ;;  %v3668_v26 = vand.u32 4294901760, %v387_v62  ;;  %v3671_v30 = vsub.f32 %v389_v48, %v3631_v58  ;;  %v3675_v31 = vand.u32 4294901760, %v386_v6  ;;  %v3677_v32 = vand.u32 4294901760, %v416_v7  ;;  %p3318_p12 = pnand %p3317_p11, %p3463_p5  ;;  %p3323_p2 = por %p3322_p1, %p3321_p0 }
  0x25   : > { %583 = vmatpush.msra.mxu2 %v3533_v21  ;;  %633 = vmatpush.msra.mxu3 %v3521_v17  ;;  %v511_v37 = vand.u32 4294901760, %v510_v63  ;;  %v522_v38 = vsub.f32 %v3615_v52, %v4811_v1  ;;  %v4809_v39 = vand.u32 4294901760, %v3651_v2  ;;  %v3688_v42 = vsub.f32 %v388_v54, %v3647_v0  ;;  %v411_v1 = vld [vmem:[%s4798_s1 + $0xc8] sm:$0xff] }
  0x26   : > { %439 = vmatpush.msra.mxu0 %v3545_v25  ;;  %488 = vmatpush.msra.mxu1 %v487_v49  ;;  %4857 = vst [vmem:[#allocation6_spill] sm:$0xff] %v3668_v26  ;;  %v528_v43 = vsub.f32 %v3620_v53, %v4810_v8  ;;  %v3696_v44 = vsub.f32 %v417_v60, %v3662_v12  ;;  %v517_v48 = vand.u32 4294901760, %v516_v18  ;;  %v4813_v49 = vand.u32 4294901760, %v3671_v30  ;;  %p3319_p13 = pneg %p3318_p12 }
  0x27   : > { %586 = vmatpush.msra.mxu2 %v3555_v29  ;;  %635 = vmatpush.msra.mxu3 %v3545_v25  ;;  %4858 = vst [vmem:[#allocation7_spill] sm:$0xff] %v3675_v31  ;;  %v3704_v54 = vsub.f32 %v387_v62, %v3668_v26  ;;  %v3711_v57 = vsub.f32 %v386_v6, %v3675_v31  ;;  %v523_v62 = vand.u32 4294901760, %v522_v38  ;;  %v3724_v18 = vand.u32 4294901760, %v414_v47 }
  0x28   : > { %441 = vmatpush.msra.mxu0 %v3552_v28  ;;  %494 = vmatpush.msra.mxu1 %v493_v56  ;;  %v3706_v56 = vand.u32 4294901760, %v415_v34  ;;  %v3714_v60 = vsub.f32 %v416_v7, %v3677_v32  ;;  %v534_v63 = vsub.f32 %v3651_v2, %v4809_v39  ;;  %v529_v6 = vand.u32 4294901760, %v528_v43  ;;  %p3324_p3 = pnand %p3323_p2, %p3319_p13 }
  0x29   : > { %589 = vmatpush.msra.mxu2 %v3583_v40  ;;  %637 = vmatpush.msra.mxu3 %v3552_v28  ;;  %v4820_v7 = vand.u32 4294901760, %v3696_v44  ;;  %v540_v38 = vsub.f32 %v3671_v30, %v4813_v49  ;;  %v4822_v39 = vand.u32 4294901760, %v3704_v54  ;;  %v3754_v51 = vsub.f32 %v414_v47, %v3724_v18 }
  0x2a   : > { %443 = vmatpush.msra.mxu0 %v3573_v35  ;;  %500 = vmatpush.msra.mxu1 %v499_v61  ;;  %v413_v61 = vld [vmem:[%s4798_s1 + $0xd8] sm:$0xff]  ;;  %v3738_v8 = vsub.f32 %v415_v34, %v3706_v56  ;;  %v4824_v59 = vand.u32 4294901760, %v3714_v60  ;;  %v535_v49 = vand.u32 4294901760, %v534_v63  ;;  %v3766_v63 = vand.u32 4294901760, %v411_v1 }
  0x2b   : > { %592 = vmatpush.msra.mxu2 %v3597_v46  ;;  %639 = vmatpush.msra.mxu3 %v3573_v35  ;;  %v3740_v43 = vand.u32 4294901760, %v413_v61  ;;  %v541_v47 = vand.u32 4294901760, %v540_v38  ;;  %v3781_v24 = vand.u32 4294901760, %v410_v36  ;;  %vm1840_vm1 = vcmask 1043456  }
  0x2c   : > { %445 = vmatpush.msra.mxu0 %v3586_v41  ;;  %506 = vmatpush.msra.mxu1 %v505_v13  ;;  %v4817_v13 = vand.u32 4294901760, %v3688_v42  ;;  %v3798_v33 = vsub.f32 %v411_v1, %v3766_v63  ;;  %v3812_v1 = vld.sshfl [vmem:[#allocation1 + $0x8] sm:$0xff pattern:$0x75316420]  ;;  %vm2154_vm2 = vcmask 64512   ;;  %vm2500_vm6 = vcmask 130048  }
  0x2d   : > { %595 = vmatpush.msra.mxu2 %v3615_v52  ;;  %641 = vmatpush.msra.mxu3 %v3586_v41  ;;  %v3774_v27 = vsub.f32 %v413_v61, %v3740_v43 }
  0x2e   : > { %447 = vmatpush.msra.mxu0 %v3611_v50  ;;  %512 = vmatpush.msra.mxu1 %v511_v37  ;;  %v412_v37 = vld [vmem:[%s4798_s1 + $0xd0] sm:$0xff]  ;;  %v546_v34 = vsub.f32 %v3688_v42, %v4817_v13  ;;  %v552_v13 = vsub.f32 %v3704_v54, %v4822_v39  ;;  %v4860_v39 = vand.u32 4294901760, %v3515_v15 }
  0x2f   : > { %598 = vmatpush.msra.mxu2 %v3620_v53  ;;  %643 = vmatpush.msra.mxu3 %v3611_v50  ;;  %v3756_v45 = vand.u32 4294901760, %v412_v37 }
  0x30   : > { %449 = vmatpush.msra.mxu0 %v3631_v58  ;;  %518 = vmatpush.msra.mxu1 %v517_v48  ;;  %v4825_v48 = vand.u32 4294901760, %v3711_v57  ;;  %v547_v38 = vand.u32 4294901760, %v546_v34  ;;  %v3803_v34 = vld.sshfl [vmem:[#allocation1] sm:$0xff pattern:$0x75316420] }
  0x31   : > { %601 = vmatpush.msra.mxu2 %v3651_v2  ;;  %645 = vmatpush.msra.mxu3 %v3631_v58  ;;  %v3792_v23 = vsub.f32 %v412_v37, %v3756_v45  ;;  %v4859_v37 = vand.u32 4294901760, %v3738_v8  ;;  %1138 = vst [vmem:[#allocation1] ss:$2 sm:$0xff] %v3625_v55 }
  0x32   : > { %451 = vmatpush.msra.mxu0 %v3647_v0  ;;  %524 = vmatpush.msra.mxu1 %v523_v62  ;;  %v809_v62 = vsub.f32 %v3696_v44, %v4820_v7  ;;  %v815_v7 = vsub.f32 %v3714_v60, %v4824_v59  ;;  %v558_v61 = vsub.f32 %v3711_v57, %v4825_v48  ;;  %v553_v48 = vand.u32 4294901760, %v552_v13 }
  0x33   : > { %604 = vmatpush.msra.mxu2 %v3671_v30  ;;  %647 = vmatpush.msra.mxu3 %v3647_v0  ;;  %v821_v14 = vsub.f32 %v3738_v8, %v4859_v37  ;;  %v3818_v13 = vsub.f32 %v410_v36, %v3781_v24  ;;  %v4862_v36 = vand.u32 4294901760, %v3519_v16 }
  0x34   : > { %453 = vmatpush.msra.mxu0 %v3668_v26  ;;  %530 = vmatpush.msra.mxu1 %v529_v6  ;;  %v409_v6 = vld [vmem:[%s4798_s1 + $0xb8] sm:$0xff]  ;;  %v810_v59 = vand.u32 4294901760, %v809_v62  ;;  %v559_v37 = vand.u32 4294901760, %v558_v61 }
  0x35   : > { %607 = vmatpush.msra.mxu2 %v3688_v42  ;;  %649 = vmatpush.msra.mxu3 %v3668_v26  ;;  %v3810_v62 = vand.u32 4294901760, %v409_v6  ;;  %v816_v26 = vand.u32 4294901760, %v815_v7  ;;  %v822_v61 = vand.u32 4294901760, %v821_v14 }
  0x36   : > { %455 = vmatpush.msra.mxu0 %v3675_v31  ;;  %536 = vmatpush.msra.mxu1 %v535_v49  ;;  %v408_v49 = vld [vmem:[%s4798_s1 + $0xb0] sm:$0xff] }
  0x37   : > { %610 = vmatpush.msra.mxu2 %v3704_v54  ;;  %651 = vmatpush.msra.mxu3 %v3675_v31  ;;  %v3829_v7 = vand.u32 4294901760, %v408_v49  ;;  %v3842_v55 = vsub.f32 %v409_v6, %v3810_v62 }
  0x38   : > { %662 = vmatpush.msrb.mxu0 %v467_v22  ;;  %542 = vmatpush.msra.mxu1 %v541_v47  ;;  %v407_v47 = vld [vmem:[%s4798_s1 + $0xa8] sm:$0xff]  ;;  %v4861_v22 = vand.u32 4294901760, %v3754_v51 }
  0x39   : > { %613 = vmatpush.msra.mxu2 %v3711_v57  ;;  %811 = vmatpush.msrb.mxu3 %v810_v59  ;;  %v3844_v16 = vand.u32 4294901760, %v407_v47  ;;  %v4864_v59 = vand.u32 4294901760, %v3527_v19  ;;  %v3857_v31 = vsub.f32 %v408_v49, %v3829_v7 }
  0x3a   : > { %666 = vmatpush.msrb.mxu0 %v4860_v39  ;;  %548 = vmatpush.msra.mxu1 %v547_v38  ;;  %v827_v15 = vsub.f32 %v3754_v51, %v4861_v22  ;;  %v406_v38 = vld [vmem:[%s4798_s1 + $0xa0] sm:$0xff]  ;;  %v4863_v22 = vand.u32 4294901760, %v3774_v27 }
  0x3b   : > { %766 = vmatpush.msrb.mxu2 %v3662_v12  ;;  %817 = vmatpush.msrb.mxu3 %v816_v26  ;;  %v3859_v19 = vand.u32 4294901760, %v406_v38  ;;  %v4866_v26 = vand.u32 4294901760, %v3530_v20  ;;  %v3870_v49 = vsub.f32 %v407_v47, %v3844_v16  ;;  %v4868_v20 = vand.u32 4294901760, %v3533_v21 }
  0x3c   : > { %670 = vmatpush.msrb.mxu0 %v4862_v36  ;;  %554 = vmatpush.msra.mxu1 %v553_v48  ;;  %v833_v39 = vsub.f32 %v3774_v27, %v4863_v22  ;;  %v405_v48 = vld [vmem:[%s4798_s1 + $0x98] sm:$0xff]  ;;  %v828_v14 = vand.u32 4294901760, %v827_v15  ;;  %v4865_v22 = vand.u32 4294901760, %v3792_v23  ;;  %v3889_v21 = vand.u32 4294901760, %v3803_v34 }
  0x3d   : > { %768 = vmatpush.msrb.mxu2 %v3677_v32  ;;  %823 = vmatpush.msrb.mxu3 %v822_v61  ;;  %v3872_v36 = vand.u32 4294901760, %v405_v48  ;;  %v4830_v61 = vand.u32 4294901760, %v3857_v31 }
  0x3e   : > { %674 = vmatpush.msrb.mxu0 %v4864_v59  ;;  %560 = vmatpush.msra.mxu1 %v559_v37  ;;  %v839_v6 = vsub.f32 %v3792_v23, %v4865_v22  ;;  %v4867_v59 = vand.u32 4294901760, %v3798_v33  ;;  %v834_v15 = vand.u32 4294901760, %v833_v39  ;;  %v4829_v22 = vand.u32 4294901760, %v3842_v55  ;;  %v404_v39 = vld [vmem:[%s4798_s1 + $0x90] sm:$0xff] }
  0x3f   : > { %770 = vmatpush.msrb.mxu2 %v3706_v56  ;;  %829 = vmatpush.msrb.mxu3 %v828_v14  ;;  %v868_v14 = vand.u32 4294901760, %v3870_v49 }
  0x40   : > { %678 = vmatpush.msrb.mxu0 %v4866_v26  ;;  %729 = vmatpush.msrb.mxu1 %v3483_v3  ;;  %v845_v37 = vsub.f32 %v3798_v33, %v4867_v59  ;;  %v4869_v3 = vand.u32 4294901760, %v3818_v13  ;;  %v840_v47 = vand.u32 4294901760, %v839_v6  ;;  %v3886_v59 = vsub.f32 %v406_v38, %v3859_v19 }
  0x41   : > { %772 = vmatpush.msrb.mxu2 %v3724_v18  ;;  %835 = vmatpush.msrb.mxu3 %v834_v15  ;;  %v857_v38 = vsub.f32 %v3842_v55, %v4829_v22  ;;  %v3902_v6 = vand.u32 4294901760, %v404_v39  ;;  %v863_v15 = vsub.f32 %v3857_v31, %v4830_v61  ;;  %v3917_v22 = vsub.f32 %v3803_v34, %v3889_v21 }
  0x42   : > { %682 = vmatpush.msrb.mxu0 %v4868_v20  ;;  %731 = vmatpush.msrb.mxu1 %v3485_v4  ;;  %v851_v26 = vsub.f32 %v3818_v13, %v4869_v3  ;;  %v4870_v4 = vand.u32 4294901760, %v3555_v29  ;;  %v846_v20 = vand.u32 4294901760, %v845_v37  ;;  %v403_v3 = vld [vmem:[%s4798_s1 + $0x88] sm:$0xff]  ;;  %v3905_v29 = vsub.f32 %v405_v48, %v3872_v36 }
  0x43   : > { %774 = vmatpush.msrb.mxu2 %v3740_v43  ;;  %841 = vmatpush.msrb.mxu3 %v840_v47  ;;  %v3919_v48 = vand.u32 4294901760, %v403_v3  ;;  %v869_v34 = vsub.f32 %v3870_v49, %v868_v14  ;;  %v4873_v61 = vand.u32 4294901760, %v3615_v52  ;;  %v4874_v52 = vand.u32 4294901760, %v3620_v53 }
  0x44   : > { %686 = vmatpush.msrb.mxu0 %v4870_v4  ;;  %733 = vmatpush.msrb.mxu1 %v3487_v5  ;;  %v4871_v5 = vand.u32 4294901760, %v3583_v40  ;;  %v852_v37 = vand.u32 4294901760, %v851_v26  ;;  %v874_v4 = vand.u32 4294901760, %v3886_v59  ;;  %v4872_v40 = vand.u32 4294901760, %v3597_v46 }
  0x45   : > { %776 = vmatpush.msrb.mxu2 %v3756_v45  ;;  %847 = vmatpush.msrb.mxu3 %v846_v20  ;;  %v858_v26 = vand.u32 4294901760, %v857_v38  ;;  %v880_v47 = vand.u32 4294901760, %v3905_v29  ;;  %v458_v38 = vand.u32 4294901760, %v3917_v22 }
  0x46   : > { %690 = vmatpush.msrb.mxu0 %v4871_v5  ;;  %735 = vmatpush.msrb.mxu1 %v3498_v9  ;;  %v402_v9 = vld [vmem:[%s4798_s1 + $0x80] sm:$0xff]  ;;  %v3933_v5 = vsub.f32 %v404_v39, %v3902_v6  ;;  %v875_v20 = vsub.f32 %v3886_v59, %v874_v4  ;;  %v3946_v39 = vsub.f32 %v403_v3, %v3919_v48 }
  0x47   : > { %778 = vmatpush.msrb.mxu2 %v3766_v63  ;;  %v3938_v46 = vand.u32 4294901760, %v402_v9  ;;  %853 = vmatpush.msrb.mxu3 %v852_v37  ;;  %v459_v3 = vsub.f32 %v3917_v22, %v458_v38 }
  0x48   : > { %694 = vmatpush.msrb.mxu0 %v4872_v40  ;;  %737 = vmatpush.msrb.mxu1 %v3500_v10  ;;  %v864_v10 = vand.u32 4294901760, %v863_v15  ;;  %v886_v37 = vand.u32 4294901760, %v3933_v5  ;;  %v4875_v15 = vand.u32 4294901760, %v3651_v2  ;;  %v892_v40 = vand.u32 4294901760, %v3946_v39 }
  0x49   : > { %780 = vmatpush.msrb.mxu2 %v3781_v24  ;;  %859 = vmatpush.msrb.mxu3 %v858_v26  ;;  %v3960_v53 = vsub.f32 %v402_v9, %v3938_v46  ;;  %v3966_v26 = vand.u32 4294901760, %v3812_v1  ;;  %v4877_v9 = vand.u32 4294901760, %v3688_v42  ;;  %v4879_v42 = vand.u32 4294901760, %v3711_v57  ;;  %v4881_v57 = vld [vmem:[#allocation6_spill] sm:$0xff] }
  0x4a   : > { %698 = vmatpush.msrb.mxu0 %v4873_v61  ;;  %739 = vmatpush.msrb.mxu1 %v3502_v11  ;;  %v870_v11 = vand.u32 4294901760, %v869_v34  ;;  %v881_v61 = vsub.f32 %v3905_v29, %v880_v47  ;;  %v4876_v34 = vand.u32 4294901760, %v3671_v30  ;;  %v887_v2 = vsub.f32 %v3933_v5, %v886_v37 }
  0x4b   : > { %782 = vmatpush.msrb.mxu2 %v3810_v62  ;;  %865 = vmatpush.msrb.mxu3 %v864_v10  ;;  %v898_v10 = vand.u32 4294901760, %v3960_v53  ;;  %v460_v30 = vand.u32 4294901760, %v459_v3 }
  0x4c   : > { %702 = vmatpush.msrb.mxu0 %v4874_v52  ;;  %741 = vmatpush.msrb.mxu1 %v3521_v17  ;;  %v876_v17 = vand.u32 4294901760, %v875_v20  ;;  %v3985_v20 = vsub.f32 %v3812_v1, %v3966_v26  ;;  %v4878_v52 = vand.u32 4294901760, %v3704_v54 }
  0x4d   : > { %784 = vmatpush.msrb.mxu2 %v3829_v7  ;;  %871 = vmatpush.msrb.mxu3 %v870_v11  ;;  %v899_v11 = vsub.f32 %v3960_v53, %v898_v10 }
  0x4e   : > { %706 = vmatpush.msrb.mxu0 %v4875_v15  ;;  %743 = vmatpush.msrb.mxu1 %v3545_v25  ;;  %v882_v25 = vand.u32 4294901760, %v881_v61  ;;  %v799_v1 = vand.u32 4294901760, %v3985_v20  ;;  %v4883_v61 = vld [vmem:[#allocation7_spill] sm:$0xff] }
  0x4f   : > { %786 = vmatpush.msrb.mxu2 %v3844_v16  ;;  %877 = vmatpush.msrb.mxu3 %v876_v17  ;;  %v1112_v17 = vld [vmem:[%s4799_s2 + $0x30] sm:$0xff] }
  0x50   : > { %710 = vmatpush.msrb.mxu0 %v4876_v34  ;;  %745 = vmatpush.msrb.mxu1 %v3552_v28  ;;  %v893_v28 = vsub.f32 %v3946_v39, %v892_v40 }
  0x51   : > { %788 = vmatpush.msrb.mxu2 %v3859_v19  ;;  %883 = vmatpush.msrb.mxu3 %v882_v25 }
  0x52   : > { %714 = vmatpush.msrb.mxu0 %v4877_v9  ;;  %747 = vmatpush.msrb.mxu1 %v3573_v35  ;;  %v888_v35 = vand.u32 4294901760, %v887_v2  ;;  %v894_v54 = vand.u32 4294901760, %v893_v28 }
  0x53   : > { %790 = vmatpush.msrb.mxu2 %v3872_v36  ;;  %461 = vmatmul.f32.vlgmr.msra.gmra.mxu0 %v460_v30 }
  0x54   : > { %718 = vmatpush.msrb.mxu0 %v4878_v52  ;;  %749 = vmatpush.msrb.mxu1 %v3586_v41  ;;  %v900_v41 = vand.u32 4294901760, %v899_v11 }
  0x55   : > { %792 = vmatpush.msrb.mxu2 %v3902_v6  ;;  %889 = vmatpush.msrb.mxu3 %v888_v35 }
  0x56   : > { %722 = vmatpush.msrb.mxu0 %v4879_v42  ;;  %751 = vmatpush.msrb.mxu1 %v3611_v50  ;;  %v800_v50 = vsub.f32 %v3985_v20, %v799_v1 }
  0x57   : > { %794 = vmatpush.msrb.mxu2 %v3919_v48  ;;  %895 = vmatpush.msrb.mxu3 %v894_v54 }
  0x58   : > { %909 = vmatpush.msra.mxu0 %v3696_v44  ;;  %753 = vmatpush.msrb.mxu1 %v3631_v58  ;;  %v4880_v58 = vand.u32 4294901760, %v3696_v44  ;;  %v4884_v44 = vand.u32 4294901760, %v3738_v8 }
  0x59   : > { %616 = vmatmul.f32.vlgmr.msra.gmra.mxu2 %v3917_v22  ;;  %655 = vmatmul.f32.vlgmr.msra.gmra.mxu3 %v458_v38  ;;  %v801_v22 = vand.u32 4294901760, %v800_v50 }
  0x5a   : > { %912 = vmatpush.msra.mxu0 %v3714_v60  ;;  %755 = vmatpush.msrb.mxu1 %v3647_v0  ;;  %v4882_v0 = vand.u32 4294901760, %v3714_v60  ;;  %v4885_v60 = vand.u32 4294901760, %v3754_v51 }
  0x5b   : > { %796 = vmatpush.msrb.mxu2 %v3938_v46  ;;  %901 = vmatpush.msrb.mxu3 %v900_v41 }
  0x5c   : > { %915 = vmatpush.msra.mxu0 %v3738_v8  ;;  %757 = vmatpush.msrb.mxu1 %v4881_v57  ;;  %v4886_v8 = vand.u32 4294901760, %v3774_v27 }
  0x5d   : > { %1003 = vmatpush.msra.mxu2 %v4880_v58  ;;  %562 = vmatmul.f32.vlgmr.msra.gmra.mxu1 %v3889_v21 }
  0x5e   : > { %918 = vmatpush.msra.mxu0 %v3754_v51  ;;  %1070 = vmatpush.msra.mxu3 %v3662_v12  ;;  %v4887_v51 = vand.u32 4294901760, %v3792_v23 }
  0x5f   : > { %1007 = vmatpush.msra.mxu2 %v4882_v0  ;;  %759 = vmatpush.msrb.mxu1 %v4883_v61 }
  0x60   : > { %921 = vmatpush.msra.mxu0 %v3774_v27  ;;  %1072 = vmatpush.msra.mxu3 %v3677_v32  ;;  %v4888_v27 = vand.u32 4294901760, %v3798_v33 }
  0x61   : > { %962 = vmatpush.msra.mxu1 %v3662_v12  ;;  %1011 = vmatpush.msra.mxu2 %v4884_v44  ;;  %v4889_v12 = vand.u32 4294901760, %v3818_v13 }
  0x62   : > { %802 = vmatmul.f32.vlgmr.msrb.gmra.mxu2 %v801_v22  ;;  %924 = vmatpush.msra.mxu0 %v3792_v23  ;;  %v1121_v23 = vld [vmem:[%s4799_s2 + $0x78] sm:$0xff]  ;;  %v1108_v22 = vld [vmem:[%s4799_s2 + $0x10] sm:$0xff] }
  0x63   : > { %964 = vmatpush.msra.mxu1 %v3677_v32  ;;  %1015 = vmatpush.msra.mxu2 %v4885_v60  ;;  %v4891_v32 = vand.u32 4294901760, %v3857_v31 }
  0x64   : > { %1074 = vmatpush.msra.mxu3 %v3706_v56  ;;  %724 = vmatmul.f32.vlgmr.msrb.gmra.mxu0 %v3889_v21 }
  0x65   : > { %903 = vmatmul.f32.vlgmr.msrb.gmra.mxu3 %v3966_v26  ;;  %927 = vmatpush.msra.mxu0 %v3798_v33  ;;  %v4890_v33 = vand.u32 4294901760, %v3842_v55 }
  0x66   : > { %966 = vmatpush.msra.mxu1 %v3706_v56  ;;  %1019 = vmatpush.msra.mxu2 %v4886_v8  ;;  %v4067_v56 = vand.u32 4294901760, %v1121_v23 }
  0x67   : > { %1076 = vmatpush.msra.mxu3 %v3724_v18  ;;  %761 = vmatmul.f32.vlgmr.msrb.gmra.mxu1 %v3889_v21 }
  0x68   : > { %930 = vmatpush.msra.mxu0 %v3818_v13  ;;  %968 = vmatpush.msra.mxu1 %v3724_v18 }
  0x69   : > { %1023 = vmatpush.msra.mxu2 %v4887_v51  ;;  %1078 = vmatpush.msra.mxu3 %v3740_v43 }
  0x6a   : > { %933 = vmatpush.msra.mxu0 %v3842_v55  ;;  %970 = vmatpush.msra.mxu1 %v3740_v43  ;;  %v1119_v55 = vld [vmem:[%s4799_s2 + $0x68] sm:$0xff]  ;;  %v4090_v43 = vsub.f32 %v1121_v23, %v4067_v56 }
  0x6b   : > { %1027 = vmatpush.msra.mxu2 %v4888_v27  ;;  %1080 = vmatpush.msra.mxu3 %v3756_v45  ;;  %v4087_v18 = vand.u32 4294901760, %v1119_v55  ;;  %v1107_v27 = vld [vmem:[%s4799_s2 + $0x8] sm:$0xff] }
  0x6c   : > { %936 = vmatpush.msra.mxu0 %v3857_v31  ;;  %972 = vmatpush.msra.mxu1 %v3756_v45  ;;  %v1120_v45 = vld [vmem:[%s4799_s2 + $0x70] sm:$0xff]  ;;  %v1118_v31 = vld [vmem:[%s4799_s2 + $0x60] sm:$0xff] }
  0x6d   : > { %1031 = vmatpush.msra.mxu2 %v4889_v12  ;;  %1082 = vmatpush.msra.mxu3 %v3766_v63 }
  0x6e   : > { %939 = vmatpush.msra.mxu0 %v3870_v49  ;;  %974 = vmatpush.msra.mxu1 %v3766_v63  ;;  %v1117_v63 = vld [vmem:[%s4799_s2 + $0x58] sm:$0xff]  ;;  %v1186_v49 = vand.u32 4294901760, %v4090_v43 }
  0x6f   : > { %1035 = vmatpush.msra.mxu2 %v4890_v33  ;;  %1084 = vmatpush.msra.mxu3 %v3781_v24  ;;  %v4254_v33 = vand.u32 4294901760, %v1108_v22 }
  0x70   : > { %942 = vmatpush.msra.mxu0 %v3886_v59  ;;  %976 = vmatpush.msra.mxu1 %v3781_v24  ;;  %v4077_v24 = vand.u32 4294901760, %v1120_v45  ;;  %v4117_v59 = vsub.f32 %v1119_v55, %v4087_v18 }
  0x71   : > { %1039 = vmatpush.msra.mxu2 %v4891_v32  ;;  %1086 = vmatpush.msra.mxu3 %v3810_v62  ;;  %v1137_v32 = vld [vmem:[%s4799_s2 + $0xf8] sm:$0xff] }
  0x72   : > { %945 = vmatpush.msra.mxu0 %v3905_v29  ;;  %978 = vmatpush.msra.mxu1 %v3810_v62  ;;  %v4100_v62 = vand.u32 4294901760, %v1118_v31  ;;  %v4103_v13 = vsub.f32 %v1120_v45, %v4077_v24 }
  0x73   : > { %1043 = vmatpush.msra.mxu2 %v868_v14  ;;  %1088 = vmatpush.msra.mxu3 %v3829_v7 }
  0x74   : > { %948 = vmatpush.msra.mxu0 %v3933_v5  ;;  %980 = vmatpush.msra.mxu1 %v3829_v7  ;;  %v1116_v7 = vld [vmem:[%s4799_s2 + $0x50] sm:$0xff]  ;;  %v1192_v14 = vand.u32 4294901760, %v4103_v13  ;;  %v4131_v29 = vsub.f32 %v1118_v31, %v4100_v62  ;;  %v1198_v5 = vand.u32 4294901760, %v4117_v59  ;;  %v1106_v31 = vld [vmem:[%s4799_s2] sm:$0xff] }
  0x75   : > { %1047 = vmatpush.msra.mxu2 %v874_v4  ;;  %1090 = vmatpush.msra.mxu3 %v3844_v16  ;;  %v4127_v21 = vand.u32 4294901760, %v1116_v7  ;;  %v1187_v4 = vsub.f32 %v4090_v43, %v1186_v49 }
  0x76   : > { %951 = vmatpush.msra.mxu0 %v3946_v39  ;;  %982 = vmatpush.msra.mxu1 %v3844_v16  ;;  %v4113_v16 = vand.u32 4294901760, %v1117_v63  ;;  %v1193_v39 = vsub.f32 %v4103_v13, %v1192_v14  ;;  %v1204_v15 = vand.u32 4294901760, %v4131_v29  ;;  %v1199_v34 = vsub.f32 %v4117_v59, %v1198_v5 }
  0x77   : > { %1051 = vmatpush.msra.mxu2 %v880_v47  ;;  %1092 = vmatpush.msra.mxu3 %v3859_v19 }
  0x78   : > { %954 = vmatpush.msra.mxu0 %v3960_v53  ;;  %984 = vmatpush.msra.mxu1 %v3859_v19  ;;  %v1115_v19 = vld [vmem:[%s4799_s2 + $0x48] sm:$0xff]  ;;  %v4148_v38 = vsub.f32 %v1117_v63, %v4113_v16  ;;  %v4164_v53 = vsub.f32 %v1116_v7, %v4127_v21  ;;  %v1194_v9 = vand.u32 4294901760, %v1193_v39  ;;  %v1200_v35 = vand.u32 4294901760, %v1199_v34  ;;  %v1136_v39 = vld [vmem:[%s4799_s2 + $0xf0] sm:$0xff] }
  0x79   : > { %1055 = vmatpush.msra.mxu2 %v886_v37  ;;  %1094 = vmatpush.msra.mxu3 %v3872_v36  ;;  %v4144_v47 = vand.u32 4294901760, %v1115_v19  ;;  %v4271_v7 = vand.u32 4294901760, %v1107_v27 }
  0x7a   : > { %957 = vmatmul.f32.vlgmr.msra.gmra.mxu0 %v3985_v20  ;;  %986 = vmatpush.msra.mxu1 %v3872_v36  ;;  %v1114_v36 = vld [vmem:[%s4799_s2 + $0x40] sm:$0xff]  ;;  %v1210_v25 = vand.u32 4294901760, %v4148_v38  ;;  %v4840_v30 = vand.u32 4294901760, %v4164_v53 }
  0x7b   : > { %1144 = vmatpush.msrb.mxu0 %v4067_v56  ;;  %1059 = vmatpush.msra.mxu2 %v892_v40  ;;  %v4160_v37 = vand.u32 4294901760, %v1114_v36  ;;  %v1188_v40 = vand.u32 4294901760, %v1187_v4  ;;  %v4180_v2 = vsub.f32 %v1115_v19, %v4144_v47 }
  0x7c   : > { %1096 = vmatpush.msra.mxu3 %v3902_v6  ;;  %988 = vmatpush.msra.mxu1 %v3902_v6  ;;  %v1113_v6 = vld [vmem:[%s4799_s2 + $0x38] sm:$0xff]  ;;  %v1211_v42 = vsub.f32 %v4148_v38, %v1210_v25  ;;  %v1217_v50 = vsub.f32 %v4164_v53, %v4840_v30 }
  0x7d   : > { %1146 = vmatpush.msrb.mxu0 %v4077_v24  ;;  %1063 = vmatpush.msra.mxu2 %v898_v10  ;;  %v4171_v3 = vand.u32 4294901760, %v1113_v6  ;;  %v1205_v10 = vsub.f32 %v4131_v29, %v1204_v15  ;;  %v4196_v28 = vsub.f32 %v1114_v36, %v4160_v37  ;;  %v4839_v20 = vand.u32 4294901760, %v4180_v2 }
  0x7e   : > { %1098 = vmatpush.msra.mxu3 %v3919_v48  ;;  %1065 = vmatmul.f32.vlgmr.msra.gmra.mxu2 %v3966_v26  ;;  %v1212_v61 = vand.u32 4294901760, %v1211_v42  ;;  %v1218_v12 = vand.u32 4294901760, %v1217_v50  ;;  %v4305_v42 = vsub.f32 %v1107_v27, %v4271_v7 }
  0x7f   : > { %1148 = vmatpush.msrb.mxu0 %v4087_v18  ;;  %1287 = vmatpush.msrb.mxu2 %v4090_v43  ;;  %v4202_v52 = vsub.f32 %v1113_v6, %v4171_v3  ;;  %v1206_v41 = vand.u32 4294901760, %v1205_v10  ;;  %v4838_v57 = vand.u32 4294901760, %v4196_v28  ;;  %v1223_v44 = vsub.f32 %v4180_v2, %v4839_v20  ;;  %v1135_v10 = vld [vmem:[%s4799_s2 + $0xe8] sm:$0xff] }
  0x80   : > { %990 = vmatpush.msra.mxu1 %v3919_v48  ;;  %1100 = vmatpush.msra.mxu3 %v3938_v46  ;;  %v4184_v48 = vand.u32 4294901760, %v1112_v17  ;;  %v4282_v6 = vand.u32 4294901760, %v1137_v32 }
  0x81   : > { %1102 = vmatmul.f32.vlgmr.msra.gmra.mxu3 %v3966_v26  ;;  %1150 = vmatpush.msrb.mxu0 %v4100_v62  ;;  %v1111_v26 = vld [vmem:[%s4799_s2 + $0x28] sm:$0xff]  ;;  %v4836_v0 = vand.u32 4294901760, %v4202_v52  ;;  %v1229_v23 = vsub.f32 %v4196_v28, %v4838_v57  ;;  %v1224_v63 = vand.u32 4294901760, %v1223_v44 }
  0x82   : > { %1290 = vmatpush.msrb.mxu2 %v4103_v13  ;;  %1340 = vmatpush.msrb.mxu3 %v4067_v56  ;;  %v4211_v11 = vand.u32 4294901760, %v1111_v26  ;;  %v4217_v54 = vsub.f32 %v1112_v17, %v4184_v48 }
  0x83   : > { %992 = vmatpush.msra.mxu1 %v3938_v46  ;;  %1152 = vmatpush.msrb.mxu0 %v4113_v16  ;;  %v1110_v46 = vld [vmem:[%s4799_s2 + $0x20] sm:$0xff]  ;;  %v1235_v55 = vsub.f32 %v4202_v52, %v4836_v0  ;;  %v1230_v17 = vand.u32 4294901760, %v1229_v23  ;;  %v1133_v23 = vld [vmem:[%s4799_s2 + $0xd8] sm:$0xff] }
  0x84   : > { %996 = vmatmul.f32.vlgmr.msra.gmra.mxu1 %v799_v1  ;;  %1293 = vmatpush.msrb.mxu2 %v4117_v59  ;;  %v1109_v1 = vld [vmem:[%s4799_s2 + $0x18] sm:$0xff]  ;;  %v4226_v58 = vand.u32 4294901760, %v1110_v46  ;;  %v4242_v8 = vsub.f32 %v1111_v26, %v4211_v11  ;;  %v4834_v51 = vand.u32 4294901760, %v4217_v54  ;;  %v4292_v26 = vsub.f32 %v1108_v22, %v4254_v33 }
  0x85   : > { %1189 = vmatpush.msrb.mxu1 %v1188_v40  ;;  %1342 = vmatpush.msrb.mxu3 %v4077_v24  ;;  %v4239_v60 = vand.u32 4294901760, %v1109_v1  ;;  %v4288_v40 = vand.u32 4294901760, %v1106_v31  ;;  %v4315_v22 = vsub.f32 %v1137_v32, %v4282_v6 }
  0x86   : > { %1154 = vmatpush.msrb.mxu0 %v4127_v21  ;;  %1296 = vmatpush.msrb.mxu2 %v4131_v29  ;;  %v4257_v45 = vsub.f32 %v1110_v46, %v4226_v58  ;;  %v4833_v19 = vand.u32 4294901760, %v4242_v8  ;;  %v1241_v4 = vsub.f32 %v4217_v54, %v4834_v51  ;;  %v4835_v44 = vand.u32 4294901760, %v4292_v26 }
  0x87   : > { %1195 = vmatpush.msrb.mxu1 %v1194_v9  ;;  %1344 = vmatpush.msrb.mxu3 %v4087_v18  ;;  %v4275_v36 = vsub.f32 %v1109_v1, %v4239_v60  ;;  %v1236_v9 = vand.u32 4294901760, %v1235_v55  ;;  %v4307_v1 = vand.u32 4294901760, %v1136_v39  ;;  %v4323_v27 = vsub.f32 %v1106_v31, %v4288_v40 }
  0x88   : > { %1156 = vmatpush.msrb.mxu0 %v4144_v47  ;;  %1299 = vmatpush.msrb.mxu2 %v4148_v38  ;;  %v4831_v34 = vand.u32 4294901760, %v4257_v45  ;;  %v1247_v46 = vsub.f32 %v4242_v8, %v4833_v19  ;;  %v1242_v50 = vand.u32 4294901760, %v1241_v4 }
  0x89   : > { %1201 = vmatpush.msrb.mxu1 %v1200_v35  ;;  %1346 = vmatpush.msrb.mxu3 %v4100_v62  ;;  %v4832_v35 = vand.u32 4294901760, %v4275_v36  ;;  %v4340_v4 = vsub.f32 %v1136_v39, %v4307_v1  ;;  %v1265_v39 = vsub.f32 %v4292_v26, %v4835_v44 }
  0x8a   : > { %1158 = vmatpush.msrb.mxu0 %v4160_v37  ;;  %1302 = vmatpush.msrb.mxu2 %v4164_v53  ;;  %v1248_v55 = vand.u32 4294901760, %v1247_v46 }
  0x8b   : > { %1207 = vmatpush.msrb.mxu1 %v1206_v41  ;;  %1348 = vmatpush.msrb.mxu3 %v4113_v16  ;;  %v1134_v41 = vld [vmem:[%s4799_s2 + $0xe0] sm:$0xff]  ;;  %v1259_v31 = vsub.f32 %v4275_v36, %v4832_v35  ;;  %v4842_v35 = vand.u32 4294901760, %v4323_v27  ;;  %v4843_v44 = vand.u32 4294901760, %v4340_v4 }
  0x8c   : > { %1160 = vmatpush.msrb.mxu0 %v4171_v3  ;;  %1305 = vmatpush.msrb.mxu2 %v4180_v2  ;;  %v4332_v32 = vand.u32 4294901760, %v1134_v41 }
  0x8d   : > { %1213 = vmatpush.msrb.mxu1 %v1212_v61  ;;  %1350 = vmatpush.msrb.mxu3 %v4127_v21  ;;  %v1253_v61 = vsub.f32 %v4257_v45, %v4831_v34  ;;  %v4345_v34 = vand.u32 4294901760, %v1133_v23  ;;  %v1277_v57 = vsub.f32 %v4323_v27, %v4842_v35 }
  0x8e   : > { %1162 = vmatpush.msrb.mxu0 %v4184_v48  ;;  %1308 = vmatpush.msrb.mxu2 %v4196_v28  ;;  %v4361_v51 = vsub.f32 %v1134_v41, %v4332_v32 }
  0x8f   : > { %1219 = vmatpush.msrb.mxu1 %v1218_v12  ;;  %1352 = vmatpush.msrb.mxu3 %v4144_v47  ;;  %v4325_v12 = vand.u32 4294901760, %v1135_v10  ;;  %v1254_v46 = vand.u32 4294901760, %v1253_v61  ;;  %v1260_v61 = vand.u32 4294901760, %v1259_v31  ;;  %v1130_v31 = vld [vmem:[%s4799_s2 + $0xc0] sm:$0xff] }
  0x90   : > { %1164 = vmatpush.msrb.mxu0 %v4211_v11  ;;  %1311 = vmatpush.msrb.mxu2 %v4202_v52  ;;  %v4405_v43 = vand.u32 4294901760, %v1130_v31 }
  0x91   : > { %1225 = vmatpush.msrb.mxu1 %v1224_v63  ;;  %1354 = vmatpush.msrb.mxu3 %v4160_v37  ;;  %v4837_v63 = vand.u32 4294901760, %v4305_v42  ;;  %v4356_v19 = vsub.f32 %v1135_v10, %v4325_v12 }
  0x92   : > { %1166 = vmatpush.msrb.mxu0 %v4226_v58  ;;  %1314 = vmatpush.msrb.mxu2 %v4217_v54 }
  0x93   : > { %1231 = vmatpush.msrb.mxu1 %v1230_v17  ;;  %1356 = vmatpush.msrb.mxu3 %v4171_v3  ;;  %v4841_v17 = vand.u32 4294901760, %v4315_v22  ;;  %v1271_v10 = vsub.f32 %v4305_v42, %v4837_v63  ;;  %v1266_v63 = vand.u32 4294901760, %v1265_v39  ;;  %v4844_v20 = vand.u32 4294901760, %v4356_v19 }
  0x94   : > { %1168 = vmatpush.msrb.mxu0 %v4239_v60  ;;  %1317 = vmatpush.msrb.mxu2 %v4242_v8 }
  0x95   : > { %1237 = vmatpush.msrb.mxu1 %v1236_v9  ;;  %1358 = vmatpush.msrb.mxu3 %v4184_v48  ;;  %v1132_v9 = vld [vmem:[%s4799_s2 + $0xd0] sm:$0xff]  ;;  %v1528_v41 = vsub.f32 %v4315_v22, %v4841_v17  ;;  %v1272_v39 = vand.u32 4294901760, %v1271_v10  ;;  %v1534_v17 = vsub.f32 %v4340_v4, %v4843_v44  ;;  %v1278_v44 = vand.u32 4294901760, %v1277_v57  ;;  %v1127_v57 = vld [vmem:[%s4799_s2 + $0xa8] sm:$0xff] }
  0x96   : > { %1170 = vmatpush.msrb.mxu0 %v4254_v33  ;;  %1320 = vmatpush.msrb.mxu2 %v4257_v45  ;;  %v4371_v0 = vand.u32 4294901760, %v1132_v9  ;;  %v1128_v10 = vld [vmem:[%s4799_s2 + $0xb0] sm:$0xff]  ;;  %v4452_v29 = vand.u32 4294901760, %v1127_v57 }
  0x97   : > { %1243 = vmatpush.msrb.mxu1 %v1242_v50  ;;  %1360 = vmatpush.msrb.mxu3 %v4211_v11  ;;  %v1131_v50 = vld [vmem:[%s4799_s2 + $0xc8] sm:$0xff]  ;;  %v4437_v59 = vand.u32 4294901760, %v1128_v10 }
  0x98   : > { %1172 = vmatpush.msrb.mxu0 %v4271_v7  ;;  %1323 = vmatpush.msrb.mxu2 %v4275_v36  ;;  %v4389_v30 = vand.u32 4294901760, %v1131_v50  ;;  %v4403_v35 = vsub.f32 %v1132_v9, %v4371_v0  ;;  %v1540_v9 = vsub.f32 %v4356_v19, %v4844_v20  ;;  %v4435_v20 = vsub.f32 %v1130_v31, %v4405_v43 }
  0x99   : > { %1249 = vmatpush.msrb.mxu1 %v1248_v55  ;;  %1362 = vmatpush.msrb.mxu3 %v4226_v58  ;;  %v4379_v55 = vsub.f32 %v1133_v23, %v4345_v34  ;;  %v4845_v23 = vand.u32 4294901760, %v4361_v51 }
  0x9a   : > { %1174 = vmatpush.msrb.mxu0 %v4288_v40  ;;  %1326 = vmatpush.msrb.mxu2 %v4292_v26  ;;  %v4419_v13 = vsub.f32 %v1131_v50, %v4389_v30  ;;  %v1535_v50 = vand.u32 4294901760, %v1534_v17  ;;  %v1126_v17 = vld [vmem:[%s4799_s2 + $0xa0] sm:$0xff] }
  0x9b   : > { %1255 = vmatpush.msrb.mxu1 %v1254_v46  ;;  %1364 = vmatpush.msrb.mxu3 %v4239_v60  ;;  %v1129_v46 = vld [vmem:[%s4799_s2 + $0xb8] sm:$0xff]  ;;  %v4468_v38 = vand.u32 4294901760, %v1126_v17 }
  0x9c   : > { %1381 = vmatpush.msra.mxu0 %v1186_v49  ;;  %1329 = vmatpush.msrb.mxu2 %v4305_v42  ;;  %v1529_v49 = vand.u32 4294901760, %v1528_v41  ;;  %v4847_v41 = vand.u32 4294901760, %v4403_v35  ;;  %v4848_v31 = vand.u32 4294901760, %v4419_v13 }
  0x9d   : > { %1261 = vmatpush.msrb.mxu1 %v1260_v61  ;;  %1366 = vmatpush.msrb.mxu3 %v4254_v33  ;;  %v4846_v61 = vand.u32 4294901760, %v4379_v55 }
  0x9e   : > { %1385 = vmatpush.msra.mxu0 %v1192_v14  ;;  %1332 = vmatpush.msrb.mxu2 %v4323_v27  ;;  %v4421_v14 = vand.u32 4294901760, %v1129_v46 }
  0x9f   : > { %1267 = vmatpush.msrb.mxu1 %v1266_v63  ;;  %1368 = vmatpush.msrb.mxu3 %v4271_v7  ;;  %v1546_v63 = vsub.f32 %v4361_v51, %v4845_v23 }
  0xa0   : > { %1389 = vmatpush.msra.mxu0 %v1198_v5  ;;  %1485 = vmatpush.msra.mxu2 %v4282_v6  ;;  %v1552_v5 = vsub.f32 %v4379_v55, %v4846_v61  ;;  %v4450_v23 = vsub.f32 %v1129_v46, %v4421_v14  ;;  %v1125_v61 = vld [vmem:[%s4799_s2 + $0x98] sm:$0xff]  ;;  %v4849_v46 = vand.u32 4294901760, %v4435_v20 }
  0xa1   : > { %1273 = vmatpush.msrb.mxu1 %v1272_v39  ;;  %1370 = vmatpush.msrb.mxu3 %v4288_v40  ;;  %v1541_v39 = vand.u32 4294901760, %v1540_v9 }
  0xa2   : > { %1393 = vmatpush.msra.mxu0 %v1204_v15  ;;  %1487 = vmatpush.msra.mxu2 %v4307_v1  ;;  %v1547_v15 = vand.u32 4294901760, %v1546_v63  ;;  %v1553_v9 = vand.u32 4294901760, %v1552_v5  ;;  %v1564_v63 = vsub.f32 %v4419_v13, %v4848_v31  ;;  %v4497_v31 = vsub.f32 %v1126_v17, %v4468_v38 }
  0xa3   : > { %1530 = vmatpush.msra.mxu3 %v1529_v49  ;;  %1279 = vmatpush.msrb.mxu1 %v1278_v44  ;;  %v1558_v44 = vsub.f32 %v4403_v35, %v4847_v41  ;;  %v4466_v49 = vsub.f32 %v1128_v10, %v4437_v59  ;;  %v4479_v10 = vsub.f32 %v1127_v57, %v4452_v29  ;;  %v4481_v41 = vand.u32 4294901760, %v1125_v61 }
  0xa4   : > { %1397 = vmatpush.msra.mxu0 %v1210_v25  ;;  %1489 = vmatpush.msra.mxu2 %v4325_v12  ;;  %v4892_v25 = vand.u32 4294901760, %v4164_v53  ;;  %v1124_v53 = vld [vmem:[%s4799_s2 + $0x90] sm:$0xff]  ;;  %v1570_v57 = vsub.f32 %v4435_v20, %v4849_v46 }
  0xa5   : > { %1448 = vmatpush.msra.mxu1 %v4067_v56  ;;  %1536 = vmatpush.msra.mxu3 %v1535_v50  ;;  %v1139_v56 = vld.sshfl [vmem:[#allocation1] sm:$0xff pattern:$0x75316420]  ;;  %v1575_v50 = vand.u32 4294901760, %v4450_v23  ;;  %v4513_v46 = vsub.f32 %v1125_v61, %v4481_v41  ;;  %v1593_v61 = vand.u32 4294901760, %v4497_v31 }
  0xa6   : > { %1401 = vmatpush.msra.mxu0 %v4892_v25  ;;  %1491 = vmatpush.msra.mxu2 %v4332_v32  ;;  %v4489_v5 = vand.u32 4294901760, %v1139_v56  ;;  %v4850_v25 = vand.u32 4294901760, %v4466_v49 }
  0xa7   : > { %1450 = vmatpush.msra.mxu1 %v4077_v24  ;;  %1542 = vmatpush.msra.mxu3 %v1541_v39  ;;  %v4893_v24 = vand.u32 4294901760, %v4180_v2  ;;  %v1559_v39 = vand.u32 4294901760, %v1558_v44  ;;  %v1123_v2 = vld [vmem:[%s4799_s2 + $0x88] sm:$0xff]  ;;  %v1565_v44 = vand.u32 4294901760, %v1564_v63  ;;  %v1576_v17 = vsub.f32 %v4450_v23, %v1575_v50 }
  0xa8   : > { %1493 = vmatpush.msra.mxu2 %v4345_v34  ;;  %v1571_v63 = vand.u32 4294901760, %v1570_v57  ;;  %v1599_v57 = vand.u32 4294901760, %v4513_v46  ;;  %1281 = vmatmul.f32.vlgmr.msrb.gmra.mxu1 %v4489_v5 }
  0xa9   : > { %1405 = vmatpush.msra.mxu0 %v4893_v24  ;;  %1452 = vmatpush.msra.mxu1 %v4087_v18  ;;  %v4894_v18 = vand.u32 4294901760, %v4196_v28  ;;  %v4851_v24 = vand.u32 4294901760, %v4479_v10  ;;  %v4895_v28 = vand.u32 4294901760, %v4202_v52  ;;  %v1582_v52 = vsub.f32 %v4466_v49, %v4850_v25 }
  0xaa   : > { %1548 = vmatpush.msra.mxu3 %v1547_v15  ;;  %v4505_v15 = vand.u32 4294901760, %v1124_v53  ;;  %1495 = vmatpush.msra.mxu2 %v4371_v0 }
  0xab   : > { %1409 = vmatpush.msra.mxu0 %v4894_v18  ;;  %1454 = vmatpush.msra.mxu1 %v4100_v62  ;;  %v4519_v62 = vsub.f32 %v1139_v56, %v4489_v5  ;;  %v4521_v18 = vand.u32 4294901760, %v1123_v2 }
  0xac   : > { %1554 = vmatpush.msra.mxu3 %v1553_v9  ;;  %v1122_v9 = vld [vmem:[%s4799_s2 + $0x80] sm:$0xff]  ;;  %1497 = vmatpush.msra.mxu2 %v4389_v30  ;;  %v4535_v56 = vsub.f32 %v1124_v53, %v4505_v15 }
  0xad   : > { %1413 = vmatpush.msra.mxu0 %v4895_v28  ;;  %1456 = vmatpush.msra.mxu1 %v4113_v16  ;;  %v4896_v16 = vand.u32 4294901760, %v4217_v54  ;;  %v1577_v28 = vand.u32 4294901760, %v1576_v17  ;;  %v4542_v25 = vand.u32 4294901760, %v1122_v9  ;;  %v4897_v54 = vand.u32 4294901760, %v4242_v8 }
  0xae   : > { %1560 = vmatpush.msra.mxu3 %v1559_v39  ;;  %1499 = vmatpush.msra.mxu2 %v4405_v43  ;;  %v1588_v39 = vsub.f32 %v4479_v10, %v4851_v24  ;;  %v4549_v53 = vsub.f32 %v1123_v2, %v4521_v18  ;;  %v1594_v17 = vsub.f32 %v4497_v31, %v1593_v61  ;;  %v4898_v24 = vand.u32 4294901760, %v4257_v45 }
  0xaf   : > { %1417 = vmatpush.msra.mxu0 %v4896_v16  ;;  %1458 = vmatpush.msra.mxu1 %v4127_v21  ;;  %v1177_v21 = vand.u32 4294901760, %v4519_v62  ;;  %v1140_v16 = vld.sshfl [vmem:[#allocation1 + $0x8] sm:$0xff pattern:$0x75316420]  ;;  %v1600_v2 = vsub.f32 %v4513_v46, %v1599_v57 }
  0xb0   : > { %1566 = vmatpush.msra.mxu3 %v1565_v44  ;;  %1501 = vmatpush.msra.mxu2 %v4421_v14  ;;  %v1583_v44 = vand.u32 4294901760, %v1582_v52  ;;  %v1589_v8 = vand.u32 4294901760, %v1588_v39  ;;  %v4899_v52 = vand.u32 4294901760, %v4275_v36  ;;  %v1611_v45 = vand.u32 4294901760, %v4549_v53 }
  0xb1   : > { %1421 = vmatpush.msra.mxu0 %v4897_v54  ;;  %1460 = vmatpush.msra.mxu1 %v4144_v47  ;;  %v1605_v47 = vand.u32 4294901760, %v4535_v56  ;;  %v4900_v39 = vand.u32 4294901760, %v4292_v26  ;;  %v4901_v54 = vand.u32 4294901760, %v4305_v42 }
  0xb2   : > { %1572 = vmatpush.msra.mxu3 %v1571_v63  ;;  %1503 = vmatpush.msra.mxu2 %v4437_v59  ;;  %v4564_v63 = vsub.f32 %v1122_v9, %v4542_v25 }
  0xb3   : > { %1425 = vmatpush.msra.mxu0 %v4898_v24  ;;  %1462 = vmatpush.msra.mxu1 %v4160_v37  ;;  %v1178_v37 = vsub.f32 %v4519_v62, %v1177_v21  ;;  %v4571_v24 = vand.u32 4294901760, %v1140_v16  ;;  %v1606_v36 = vsub.f32 %v4535_v56, %v1605_v47 }
  0xb4   : > { %1578 = vmatpush.msra.mxu3 %v1577_v28  ;;  %1505 = vmatpush.msra.mxu2 %v4452_v29  ;;  %v1595_v28 = vand.u32 4294901760, %v1594_v17  ;;  %v1617_v9 = vand.u32 4294901760, %v4564_v63  ;;  %v4902_v17 = vand.u32 4294901760, %v4323_v27  ;;  %v4903_v27 = vand.u32 4294901760, %v4315_v22 }
  0xb5   : > { %1429 = vmatpush.msra.mxu0 %v4899_v52  ;;  %1464 = vmatpush.msra.mxu1 %v4171_v3  ;;  %v1601_v3 = vand.u32 4294901760, %v1600_v2  ;;  %v4589_v26 = vsub.f32 %v1140_v16, %v4571_v24  ;;  %v1607_v42 = vand.u32 4294901760, %v1606_v36 }
  0xb6   : > { %1584 = vmatpush.msra.mxu3 %v1583_v44  ;;  %1507 = vmatpush.msra.mxu2 %v4468_v38  ;;  %v1179_v44 = vand.u32 4294901760, %v1178_v37 }
  0xb7   : > { %1433 = vmatpush.msra.mxu0 %v4900_v39  ;;  %1466 = vmatpush.msra.mxu1 %v4184_v48  ;;  %v1612_v48 = vsub.f32 %v4549_v53, %v1611_v45 }
  0xb8   : > { %1590 = vmatpush.msra.mxu3 %v1589_v8  ;;  %1509 = vmatpush.msra.mxu2 %v4481_v41  ;;  %v1518_v8 = vand.u32 4294901760, %v4589_v26 }
  0xb9   : > { %1437 = vmatpush.msra.mxu0 %v4901_v54  ;;  %1468 = vmatpush.msra.mxu1 %v4211_v11  ;;  %v1618_v11 = vsub.f32 %v4564_v63, %v1617_v9  ;;  %v1613_v16 = vand.u32 4294901760, %v1612_v48 }
  0xba   : > { %1596 = vmatpush.msra.mxu3 %v1595_v28  ;;  %1511 = vmatpush.msra.mxu2 %v4505_v15 }
  0xbb   : > { %1441 = vmatpush.msra.mxu0 %v4902_v17  ;;  %1470 = vmatpush.msra.mxu1 %v4226_v58  ;;  %v1619_v58 = vand.u32 4294901760, %v1618_v11  ;;  %v1828_v17 = vld [vmem:[%s4805_s8] sm:$0xf] }
  0xbc   : > { %1602 = vmatpush.msra.mxu3 %v1601_v3  ;;  %1180 = vmatmul.f32.vlgmr.msrb.gmra.mxu0 %v1179_v44 }
  0xbd   : > { %1472 = vmatpush.msra.mxu1 %v4239_v60  ;;  %1628 = vmatpush.msrb.mxu0 %v4315_v22  ;;  %v1519_v60 = vsub.f32 %v4589_v26, %v1518_v8  ;;  %v4905_v22 = vand.u32 4294901760, %v4356_v19 }
  0xbe   : > { %1513 = vmatpush.msra.mxu2 %v4521_v18  ;;  %1608 = vmatpush.msra.mxu3 %v1607_v42 }
  0xbf   : > { %1335 = vmatmul.f32.vlgmr.msrb.gmra.mxu2 %v4519_v62  ;;  %1631 = vmatpush.msrb.mxu0 %v4340_v4  ;;  %v1520_v62 = vand.u32 4294901760, %v1519_v60 }
  0xc0   : > { %1474 = vmatpush.msra.mxu1 %v4254_v33  ;;  %1515 = vmatpush.msra.mxu2 %v4542_v25  ;;  %v4904_v33 = vand.u32 4294901760, %v4340_v4 }
  0xc1   : > { %1614 = vmatpush.msra.mxu3 %v1613_v16  ;;  %1634 = vmatpush.msrb.mxu0 %v4356_v19  ;;  %v4907_v19 = vand.u32 4294901760, %v4379_v55 }
  0xc2   : > { %1374 = vmatmul.f32.vlgmr.msrb.gmra.mxu3 %v1177_v21  ;;  %1722 = vmatpush.msrb.mxu2 %v4903_v27 }
  0xc3   : > { %1476 = vmatpush.msra.mxu1 %v4271_v7  ;;  %1620 = vmatpush.msra.mxu3 %v1619_v58  ;;  %v4906_v7 = vand.u32 4294901760, %v4361_v51 }
  0xc4   : > { %1637 = vmatpush.msrb.mxu0 %v4361_v51  ;;  %1726 = vmatpush.msrb.mxu2 %v4904_v33  ;;  %v4908_v51 = vand.u32 4294901760, %v4403_v35 }
  0xc5   : > { %1789 = vmatpush.msrb.mxu3 %v4282_v6  ;;  %1478 = vmatpush.msra.mxu1 %v4288_v40  ;;  %v4910_v40 = vand.u32 4294901760, %v4435_v20 }
  0xc6   : > { %1640 = vmatpush.msrb.mxu0 %v4379_v55  ;;  %1730 = vmatpush.msrb.mxu2 %v4905_v22 }
  0xc7   : > { %1681 = vmatpush.msrb.mxu1 %v4282_v6  ;;  %1791 = vmatpush.msrb.mxu3 %v4307_v1  ;;  %v4909_v6 = vand.u32 4294901760, %v4419_v13 }
  0xc8   : > { %1521 = vmatmul.f32.vlgmr.msra.gmra.mxu2 %v1520_v62  ;;  %1643 = vmatpush.msrb.mxu0 %v4403_v35 }
  0xc9   : > { %1683 = vmatpush.msrb.mxu1 %v4307_v1  ;;  %1734 = vmatpush.msrb.mxu2 %v4906_v7 }
  0xca   : > { %1793 = vmatpush.msrb.mxu3 %v4325_v12  ;;  %1443 = vmatmul.f32.vlgmr.msra.gmra.mxu0 %v4489_v5 }
  0xcb   : > { %1622 = vmatmul.f32.vlgmr.msra.gmra.mxu3 %v4571_v24  ;;  %1646 = vmatpush.msrb.mxu0 %v4419_v13 }
  0xcc   : > { %1685 = vmatpush.msrb.mxu1 %v4325_v12  ;;  %1738 = vmatpush.msrb.mxu2 %v4907_v19 }
  0xcd   : > { %1795 = vmatpush.msrb.mxu3 %v4332_v32  ;;  %1480 = vmatmul.f32.vlgmr.msra.gmra.mxu1 %v4489_v5 }
  0xce   : > { %1649 = vmatpush.msrb.mxu0 %v4435_v20  ;;  %1687 = vmatpush.msrb.mxu1 %v4332_v32 }
  0xcf   : > { %1742 = vmatpush.msrb.mxu2 %v4908_v51  ;;  %1797 = vmatpush.msrb.mxu3 %v4345_v34 }
  0xd0   : > { %1652 = vmatpush.msrb.mxu0 %v4450_v23  ;;  %1689 = vmatpush.msrb.mxu1 %v4345_v34  ;;  %v462_v34 = vpop.f32.mrf.mxu0 }
  0xd1   : > { %1746 = vmatpush.msrb.mxu2 %v4909_v6  ;;  %1799 = vmatpush.msrb.mxu3 %v4371_v0 }
  0xd2   : > { %1655 = vmatpush.msrb.mxu0 %v4466_v49  ;;  %1691 = vmatpush.msrb.mxu1 %v4371_v0  ;;  %v4911_v0 = vand.u32 4294901760, %v4466_v49 }
  0xd3   : > { %1750 = vmatpush.msrb.mxu2 %v4910_v40  ;;  %1801 = vmatpush.msrb.mxu3 %v4389_v30 }
  0xd4   : > { %1658 = vmatpush.msrb.mxu0 %v4479_v10  ;;  %1693 = vmatpush.msrb.mxu1 %v4389_v30  ;;  %v4912_v30 = vand.u32 4294901760, %v4479_v10 }
  0xd5   : > { %1754 = vmatpush.msrb.mxu2 %v1575_v50  ;;  %1803 = vmatpush.msrb.mxu3 %v4405_v43  ;;  %v1826_v50 = vld [vmem:[%s4803_s6] sm:$0xff] }
  0xd6   : > { %1661 = vmatpush.msrb.mxu0 %v4497_v31  ;;  %1695 = vmatpush.msrb.mxu1 %v4405_v43  ;;  %v1825_v43 = vld [vmem:[%s4802_s5] sm:$0xff] }
  0xd7   : > { %1758 = vmatpush.msrb.mxu2 %v4911_v0  ;;  %1805 = vmatpush.msrb.mxu3 %v4421_v14 }
  0xd8   : > { %1664 = vmatpush.msrb.mxu0 %v4513_v46  ;;  %1697 = vmatpush.msrb.mxu1 %v4421_v14  ;;  %v1838_v14 = vsel %vm1836_vm0, %v1825_v43, 0 }
  0xd9   : > { %1762 = vmatpush.msrb.mxu2 %v4912_v30  ;;  %1807 = vmatpush.msrb.mxu3 %v4437_v59 }
  0xda   : > { %1667 = vmatpush.msrb.mxu0 %v4535_v56  ;;  %1699 = vmatpush.msrb.mxu1 %v4437_v59  ;;  %v563_v20 = vpop.f32.mrf.mxu1  ;;  %v3364_v59 = vmov 0  }
  0xdb   : > { %1766 = vmatpush.msrb.mxu2 %v1593_v61  ;;  %1809 = vmatpush.msrb.mxu3 %v4452_v29  ;;  %v564_v35 = vadd.f32 %v563_v20, %v462_v34 }
  0xdc   : > { %1670 = vmatpush.msrb.mxu0 %v4549_v53  ;;  %1701 = vmatpush.msrb.mxu1 %v4452_v29  ;;  %v617_v1 = vpop.f32.mrf.mxu2  ;;  %v656_v32 = vpop.f32.mrf.mxu3  ;;  %v4702_v29 = vand.u32 4294901760, %v1838_v14 }
  0xdd   : > { %1770 = vmatpush.msrb.mxu2 %v1599_v57  ;;  %1811 = vmatpush.msrb.mxu3 %v4468_v38  ;;  %v618_v12 = vadd.f32 %v617_v1, %v564_v35 }
  0xde   : > { %1673 = vmatpush.msrb.mxu0 %v4564_v63  ;;  %1703 = vmatpush.msrb.mxu1 %v4468_v38  ;;  %v4705_v38 = vsub.f32 %v1838_v14, %v4702_v29 }
  0xdf   : > { %1774 = vmatpush.msrb.mxu2 %v1605_v47  ;;  %1813 = vmatpush.msrb.mxu3 %v4481_v41  ;;  %v657_v4 = vadd.f32 %v656_v32, %v618_v12 }
  0xe0   : > { %1676 = vmatmul.f32.vlgmr.msrb.gmra.mxu0 %v4589_v26  ;;  %1705 = vmatpush.msrb.mxu1 %v4481_v41 }
  0xe1   : > { %1778 = vmatpush.msrb.mxu2 %v1611_v45  ;;  %1815 = vmatpush.msrb.mxu3 %v4505_v15  ;;  %v725_v55 = vpop.f32.mrf.mxu0 }
  0xe2   : > { %1707 = vmatpush.msrb.mxu1 %v4505_v15  ;;  %v726_v23 = vadd.f32 %v725_v55, %v657_v4  ;;  %3290 = vset.pattern.permute.xlu0 %v3364_v59  ;;  %v1863_v15 = vand.u32 4294901760, %v4705_v38  ;;  %v1827_v55 = vld [vmem:[%s4804_s7] sm:$0xf] }
  0xe3   : > { %1782 = vmatpush.msrb.mxu2 %v1617_v9  ;;  %1817 = vmatpush.msrb.mxu3 %v4521_v18  ;;  %v2156_v14 = vsel %vm2154_vm2, %v1827_v55, 0 }
  0xe4   : > { %1784 = vmatmul.f32.vlgmr.msrb.gmra.mxu2 %v4571_v24  ;;  %1709 = vmatpush.msrb.mxu1 %v4521_v18  ;;  %v762_v13 = vpop.f32.mrf.mxu1  ;;  %v1864_v53 = vsub.f32 %v4705_v38, %v1863_v15 }
  0xe5   : > { %1819 = vmatpush.msrb.mxu3 %v4542_v25  ;;  %v763_v41 = vadd.f32 %v762_v13, %v726_v23  ;;  %3291 = vset.pattern.permute.xlu1 %v3364_v59  ;;  %v803_v31 = vpop.f32.mrf.mxu2 }
  0xe6   : > { %1821 = vmatmul.f32.vlgmr.msrb.gmra.mxu3 %v4571_v24  ;;  %1711 = vmatpush.msrb.mxu1 %v4542_v25  ;;  %v1865_v63 = vand.u32 4294901760, %v1864_v53 }
  0xe7   : > { %1715 = vmatmul.f32.vlgmr.msrb.gmra.mxu1 %v1518_v8  ;;  %v804_v46 = vadd.f32 %v803_v31, %v763_v41  ;;  %1833 = vperm.xlu0 %3290, %v1826_v50  }
  0xe8   : > { %v904_v49 = vpop.f32.mrf.mxu3 }
  0xe9   : > { %v905_v5 = vadd.f32 %v904_v49, %v804_v46  ;;  %v2175_v46 = vand.u32 4294901760, %v2156_v14 }
  0xeb   : > { %v2176_v50 = vsub.f32 %v2156_v14, %v2175_v46 }
  0xef   : > { %2151 = vperm.xlu0 %3290, %v1828_v17  }
  0xf7   : > { %v958_v10 = vpop.f32.mrf.mxu0 }
  0xf8   : > { %v959_v25 = vadd.f32 %v958_v10, %v905_v5 }
 0x101   : > { %v997_v18 = vpop.f32.mrf.mxu1  ;;  %v1066_v61 = vpop.f32.mrf.mxu2 }
 0x102   : > { %v998_v56 = vadd.f32 %v997_v18, %v959_v25  ;;  %v2177_v25 = vand.u32 4294901760, %v2176_v50 }
 0x104   : > { %v1067_v57 = vadd.f32 %v1066_v61, %v998_v56  ;;  %v1103_v21 = vpop.f32.mrf.mxu3  ;;  %v2178_v61 = vsub.f32 %v2176_v50, %v2177_v25 }
 0x106   : > { %v1104_v47 = vadd.f32 %v1103_v21, %v1067_v57  ;;  %v2179_v21 = vand.u32 4294901760, %v2178_v61 }
 0x108   : > { %v1842_v2 = vsel %vm1840_vm1, %v1104_v47, 0 }
 0x109   : > { %v1859_v52 = vand.u32 4294901760, %v1842_v2 }
 0x10b   : > { %v1886_v37 = vsub.f32 %v1842_v2, %v1859_v52  ;;  %1860 = vmatpush.msra.mxu0 %v1859_v52  ;;  %1936 = vmatpush.msra.mxu3 %v1859_v52 }
 0x10c   : > { %1866 = vmatmul.f32.vlgmr.msra.gmra.mxu0 %v1865_v63  ;;  %1940 = vmatmul.f32.vlgmr.msra.gmra.mxu3 %v1863_v15 }
 0x10d   : > { %1913 = vmatpush.msra.mxu2 %v1886_v37  ;;  %v1887_v45 = vand.u32 4294901760, %v1886_v37 }
 0x10e   : > { %1916 = vmatmul.f32.vlgmr.msra.gmra.mxu2 %v4705_v38 }
 0x10f   : > { %1962 = vmatpush.msrb.mxu0 %v1887_v45  ;;  %v1888_v24 = vsub.f32 %v1886_v37, %v1887_v45  ;;  %v1829_v45 = vld [vmem:[%s4806_s9] sm:$0xf] }
 0x111   : > { %v1889_v28 = vand.u32 4294901760, %v1888_v24 }
 0x113   : > { %1890 = vmatpush.msra.mxu1 %v1889_v28 }
 0x114   : > { %1892 = vmatmul.f32.vlgmr.msra.gmra.mxu1 %v4702_v29  ;;  %1964 = vmatmul.f32.vlgmr.msrb.gmra.mxu0 %v4702_v29 }
 0x115   : > { %1984 = vmatpush.msrb.mxu1 %v1859_v52 }
 0x11c   : > { %1986 = vmatmul.f32.vlgmr.msrb.gmra.mxu1 %v4702_v29 }
 0x125   : > { %v1282_v39 = vpop.f32.mrf.mxu1 }
 0x139   : > { %v1181_v36 = vpop.f32.mrf.mxu0 }
 0x13a   : > { %v1283_v3 = vadd.f32 %v1282_v39, %v1181_v36 }
 0x142   : > { %v1336_v9 = vpop.f32.mrf.mxu2 }
 0x143   : > { %v1337_v54 = vadd.f32 %v1336_v9, %v1283_v3  ;;  %v2329_v3 = vsel %vm2154_vm2, %v1829_v45, 0 }
 0x145   : > { %v1375_v44 = vpop.f32.mrf.mxu3 }
 0x146   : > { %v1376_v48 = vadd.f32 %v1375_v44, %v1337_v54 }
 0x147   : > { %v1444_v26 = vpop.f32.mrf.mxu0 }
 0x148   : > { %v1445_v42 = vadd.f32 %v1444_v26, %v1376_v48  ;;  %v2348_v48 = vand.u32 4294901760, %v2329_v3 }
 0x14a   : > { %v1481_v11 = vpop.f32.mrf.mxu1 }
 0x14b   : > { %v1482_v16 = vadd.f32 %v1481_v11, %v1445_v42  ;;  %v1522_v8 = vpop.f32.mrf.mxu2  ;;  %v2349_v11 = vsub.f32 %v2329_v3, %v2348_v48 }
 0x14d   : > { %v1523_v58 = vadd.f32 %v1522_v8, %v1482_v16  ;;  %v1830_v16 = vld [vmem:[%s4807_s10] sm:$0xf] }
 0x14e   : > { %v1623_v60 = vpop.f32.mrf.mxu3  ;;  %2325 = vperm.xlu1 %3291, %v1830_v16  }
 0x14f   : > { %v1624_v33 = vadd.f32 %v1623_v60, %v1523_v58  ;;  %v2350_v60 = vand.u32 4294901760, %v2349_v11 }
 0x159   : > { %v1834_v12 = vpop.permute.xlu0 %1833 }
 0x15d   : > { %v1677_v27 = vpop.f32.mrf.mxu0 }
 0x15e   : > { %v1678_v62 = vadd.f32 %v1677_v27, %v1624_v33 }
 0x164   : > { %v1716_v22 = vpop.f32.mrf.mxu1 }
 0x165   : > { %v1717_v7 = vadd.f32 %v1716_v22, %v1678_v62  ;;  %v2351_v62 = vsub.f32 %v2349_v11, %v2350_v60 }
 0x167   : > { %v1785_v19 = vpop.f32.mrf.mxu2 }
 0x168   : > { %v1786_v51 = vadd.f32 %v1785_v19, %v1717_v7  ;;  %v2352_v19 = vand.u32 4294901760, %v2351_v62 }
 0x169   : > { %v1822_v6 = vpop.f32.mrf.mxu3 }
 0x16a   : > { %v1823_v40 = vadd.f32 %v1822_v6, %v1786_v51 }
 0x16c   : > { %v1996_v0 = vsel %vm1840_vm1, %v1823_v40, 0 }
 0x16d   : > { %v2013_v30 = vand.u32 4294901760, %v1996_v0 }
 0x16f   : > { %v2040_v20 = vsub.f32 %v1996_v0, %v2013_v30  ;;  %2014 = vmatpush.msrb.mxu2 %v2013_v30  ;;  %2090 = vmatpush.msra.mxu1 %v2013_v30 }
 0x170   : > { %2020 = vmatmul.f32.vlgmr.msrb.gmra.mxu2 %v1865_v63  ;;  %2094 = vmatmul.f32.vlgmr.msra.gmra.mxu1 %v1863_v15 }
 0x171   : > { %2067 = vmatpush.msra.mxu0 %v2040_v20  ;;  %v2041_v34 = vand.u32 4294901760, %v2040_v20 }
 0x172   : > { %2070 = vmatmul.f32.vlgmr.msra.gmra.mxu0 %v4705_v38 }
 0x173   : > { %2116 = vmatpush.msra.mxu2 %v2041_v34  ;;  %v2042_v35 = vsub.f32 %v2040_v20, %v2041_v34  ;;  %v2152_v34 = vpop.permute.xlu0 %2151 }
 0x175   : > { %v2043_v1 = vand.u32 4294901760, %v2042_v35 }
 0x177   : > { %2044 = vmatpush.msrb.mxu3 %v2043_v1 }
 0x178   : > { %2046 = vmatmul.f32.vlgmr.msrb.gmra.mxu3 %v4702_v29  ;;  %2118 = vmatmul.f32.vlgmr.msra.gmra.mxu2 %v4702_v29 }
 0x179   : > { %2138 = vmatpush.msra.mxu3 %v2013_v30 }
 0x180   : > { %2140 = vmatmul.f32.vlgmr.msra.gmra.mxu3 %v4702_v29 }
 0x189   : > { %v1867_v32 = vpop.f32.mrf.mxu0 }
 0x18a   : > { %v1868_v4 = vadd.f32 %v1867_v32, %v1834_v12 }
 0x18f   : > { %v1941_v41 = vpop.f32.mrf.mxu3 }
 0x191   : > { %v1893_v23 = vpop.f32.mrf.mxu1  ;;  %v1917_v43 = vpop.f32.mrf.mxu2 }
 0x192   : > { %v1894_v13 = vadd.f32 %v1893_v23, %v1868_v4  ;;  %v1965_v31 = vpop.f32.mrf.mxu0 }
 0x194   : > { %v1918_v59 = vadd.f32 %v1917_v43, %v1894_v13  ;;  %v2498_v13 = vld [vmem:[%s4800_s3 + $0x10] sm:$0xff] }
 0x196   : > { %v1942_v49 = vadd.f32 %v1941_v41, %v1918_v59  ;;  %v2518_v41 = vand.u32 4294901760, %v2498_v13 }
 0x198   : > { %v1966_v38 = vadd.f32 %v1965_v31, %v1942_v49  ;;  %v2496_v31 = vld [vmem:[%s4800_s3] sm:$0xff]  ;;  %v2546_v49 = vsub.f32 %v2498_v13, %v2518_v41 }
 0x199   : > { %v1987_v29 = vpop.f32.mrf.mxu1 }
 0x19a   : > { %v1988_v10 = vadd.f32 %v1987_v29, %v1966_v38  ;;  %v2520_v38 = vand.u32 4294901760, %v2496_v31 }
 0x19c   : > { %v1990_v5 = vadd.f32 3.0, %v1988_v10 }
 0x19e   : > { %v1991_v15 = vmax.f32 %v1990_v5, 0.0 }
 0x1a0   : > { %v1992_v18 = vmin.f32 %v1991_v15, 6.0 }
 0x1a2   : > { %v1993_v56 = vmul.f32 0.16666667, %v1992_v18 }
 0x1a4   : > { %v1994_v57 = vmul.f32 %v1993_v56, %v1988_v10  ;;  %v2552_v10 = vsub.f32 %v2496_v31, %v2520_v38  ;;  %v2499_v56 = vld [vmem:[%s4800_s3 + $0x18] sm:$0xff] }
 0x1a6   : > { %v2173_v53 = vand.u32 4294901760, %v1994_v57  ;;  %v2553_v15 = vand.u32 4294901760, %v2552_v10 }
 0x1a8   : > { %v2200_v47 = vsub.f32 %v1994_v57, %v2173_v53  ;;  %2174 = vmatpush.msrb.mxu0 %v2173_v53  ;;  %2250 = vmatpush.msrb.mxu3 %v2173_v53  ;;  %v2554_v61 = vsub.f32 %v2552_v10, %v2553_v15 }
 0x1a9   : > { %2180 = vmatmul.f32.vlgmr.msrb.gmra.mxu0 %v2179_v21  ;;  %2254 = vmatmul.f32.vlgmr.msrb.gmra.mxu3 %v2177_v25  ;;  %v2677_v21 = vand.u32 4294901760, %v2499_v56 }
 0x1aa   : > { %v2201_v2 = vand.u32 4294901760, %v2200_v47  ;;  %2227 = vmatpush.msrb.mxu2 %v2200_v47  ;;  %v2555_v57 = vand.u32 4294901760, %v2554_v61 }
 0x1ab   : > { %2230 = vmatmul.f32.vlgmr.msrb.gmra.mxu2 %v2176_v50  ;;  %v2547_v50 = vand.u32 4294901760, %v2546_v49 }
 0x1ac   : > { %v2202_v63 = vsub.f32 %v2200_v47, %v2201_v2  ;;  %2276 = vmatpush.msra.mxu0 %v2201_v2  ;;  %v2497_v47 = vld [vmem:[%s4800_s3 + $0x8] sm:$0xff] }
 0x1ad   : > { %v2548_v25 = vsub.f32 %v2546_v49, %v2547_v50 }
 0x1ae   : > { %v2203_v52 = vand.u32 4294901760, %v2202_v63  ;;  %v2679_v63 = vand.u32 4294901760, %v2497_v47 }
 0x1af   : > { %v2549_v18 = vand.u32 4294901760, %v2548_v25  ;;  %v2823_v25 = vld [vmem:[%s4801_s4 + $0x8] sm:$0xff] }
 0x1b0   : > { %2204 = vmatpush.msrb.mxu1 %v2203_v52 }
 0x1b1   : > { %2206 = vmatmul.f32.vlgmr.msrb.gmra.mxu1 %v2175_v46  ;;  %2278 = vmatmul.f32.vlgmr.msra.gmra.mxu0 %v2175_v46 }
 0x1b2   : > { %2298 = vmatpush.msra.mxu1 %v2173_v53  ;;  %v2705_v53 = vsub.f32 %v2499_v56, %v2677_v21 }
 0x1b4   : > { %v2706_v52 = vand.u32 4294901760, %v2705_v53 }
 0x1b6   : > { %v2707_v45 = vsub.f32 %v2705_v53, %v2706_v52 }
 0x1b9   : > { %2300 = vmatmul.f32.vlgmr.msra.gmra.mxu1 %v2175_v46 }
 0x1ed   : > { %v2095_v9 = vpop.f32.mrf.mxu1 }
 0x1ef   : > { %v2071_v39 = vpop.f32.mrf.mxu0 }
 0x1f3   : > { %v2021_v37 = vpop.f32.mrf.mxu2 }
 0x1f4   : > { %v2022_v24 = vadd.f32 %v2021_v37, %v1834_v12 }
 0x1fb   : > { %v2047_v28 = vpop.f32.mrf.mxu3  ;;  %v2119_v44 = vpop.f32.mrf.mxu2 }
 0x1fc   : > { %v2048_v36 = vadd.f32 %v2047_v28, %v2022_v24  ;;  %v2711_v24 = vsub.f32 %v2497_v47, %v2679_v63  ;;  %v2708_v28 = vand.u32 4294901760, %v2707_v45 }
 0x1fe   : > { %v2072_v54 = vadd.f32 %v2071_v39, %v2048_v36  ;;  %v2712_v39 = vand.u32 4294901760, %v2711_v24 }
 0x200   : > { %v2096_v26 = vadd.f32 %v2095_v9, %v2072_v54  ;;  %v2713_v36 = vsub.f32 %v2711_v24, %v2712_v39 }
 0x202   : > { %v2120_v17 = vadd.f32 %v2119_v44, %v2096_v26  ;;  %v2714_v3 = vand.u32 4294901760, %v2713_v36 }
 0x203   : > { %v2141_v42 = vpop.f32.mrf.mxu3 }
 0x204   : > { %v2142_v8 = vadd.f32 %v2141_v42, %v2120_v17 }
 0x206   : > { %v2144_v58 = vadd.f32 3.0, %v2142_v8 }
 0x208   : > { %v2145_v27 = vmax.f32 %v2144_v58, 0.0 }
 0x20a   : > { %v2146_v33 = vmin.f32 %v2145_v27, 6.0 }
 0x20c   : > { %v2147_v22 = vmul.f32 0.16666667, %v2146_v33 }
 0x20e   : > { %v2148_v7 = vmul.f32 %v2147_v22, %v2142_v8 }
 0x210   : > { %v2346_v51 = vand.u32 4294901760, %v2148_v7 }
 0x212   : > { %v2373_v6 = vsub.f32 %v2148_v7, %v2346_v51  ;;  %2347 = vmatpush.msra.mxu2 %v2346_v51  ;;  %2423 = vmatpush.msrb.mxu1 %v2346_v51  ;;  %v2326_v7 = vpop.permute.xlu1 %2325 }
 0x213   : > { %2353 = vmatmul.f32.vlgmr.msra.gmra.mxu2 %v2352_v19  ;;  %2427 = vmatmul.f32.vlgmr.msrb.gmra.mxu1 %v2350_v60 }
 0x214   : > { %2400 = vmatpush.msrb.mxu0 %v2373_v6  ;;  %v2374_v40 = vand.u32 4294901760, %v2373_v6  ;;  %2550 = vmatpush.msra.mxu1 %v2549_v18  ;;  %v3004_v18 = vand.u32 4294901760, %v2823_v25 }
 0x215   : > { %2403 = vmatmul.f32.vlgmr.msrb.gmra.mxu0 %v2349_v11 }
 0x216   : > { %2449 = vmatpush.msrb.mxu2 %v2374_v40  ;;  %v2375_v0 = vsub.f32 %v2373_v6, %v2374_v40  ;;  %2519 = vmatpush.msra.mxu0 %v2518_v41  ;;  %v2824_v6 = vld [vmem:[%s4801_s4 + $0x10] sm:$0xff]  ;;  %v3036_v56 = vsub.f32 %v2823_v25, %v3004_v18 }
 0x217   : > { %2556 = vmatpush.msra.mxu1 %v2555_v57 }
 0x218   : > { %v2376_v30 = vand.u32 4294901760, %v2375_v0  ;;  %2578 = vmatpush.msra.mxu2 %v2546_v49  ;;  %2521 = vmatpush.msra.mxu0 %v2520_v38 }
 0x219   : > { %2655 = vmatpush.msrb.mxu1 %v2518_v41 }
 0x21a   : > { %2377 = vmatpush.msra.mxu3 %v2376_v30  ;;  %2581 = vmatpush.msra.mxu2 %v2552_v10  ;;  %v2843_v30 = vand.u32 4294901760, %v2824_v6 }
 0x21b   : > { %2379 = vmatmul.f32.vlgmr.msra.gmra.mxu3 %v2348_v48  ;;  %2451 = vmatmul.f32.vlgmr.msrb.gmra.mxu2 %v2348_v48 }
 0x21c   : > { %2471 = vmatpush.msrb.mxu3 %v2346_v51  ;;  %2630 = vmatpush.msrb.mxu0 %v2547_v50  ;;  %v2825_v50 = vld [vmem:[%s4801_s4 + $0x18] sm:$0xff] }
 0x21d   : > { %2678 = vmatpush.msrb.mxu2 %v2677_v21  ;;  %2657 = vmatpush.msrb.mxu1 %v2520_v38  ;;  %v3002_v10 = vand.u32 4294901760, %v2825_v50 }
 0x21e   : > { %2603 = vmatpush.msra.mxu3 %v2518_v41  ;;  %2634 = vmatpush.msrb.mxu0 %v2553_v15 }
 0x21f   : > { %2680 = vmatpush.msrb.mxu2 %v2679_v63  ;;  %v3030_v15 = vsub.f32 %v2825_v50, %v3002_v10 }
 0x220   : > { %2605 = vmatpush.msra.mxu3 %v2520_v38 }
 0x221   : > { %v3031_v61 = vand.u32 4294901760, %v3030_v15 }
 0x223   : > { %2473 = vmatmul.f32.vlgmr.msrb.gmra.mxu3 %v2348_v48  ;;  %v3032_v57 = vsub.f32 %v3030_v15, %v3031_v61 }
 0x224   : > { %2709 = vmatpush.msrb.mxu3 %v2708_v28 }
 0x226   : > { %v2181_v20 = vpop.f32.mrf.mxu0  ;;  %2715 = vmatpush.msrb.mxu3 %v2714_v3 }
 0x227   : > { %v2182_v35 = vadd.f32 %v2181_v20, %v2152_v34  ;;  %v2822_v34 = vld [vmem:[%s4801_s4] sm:$0xff] }
 0x22c   : > { %v2255_v4 = vpop.f32.mrf.mxu3 }
 0x22e   : > { %v2207_v1 = vpop.f32.mrf.mxu1  ;;  %v2231_v12 = vpop.f32.mrf.mxu2 }
 0x22f   : > { %v2208_v32 = vadd.f32 %v2207_v1, %v2182_v35  ;;  %v2279_v23 = vpop.f32.mrf.mxu0  ;;  %v2871_v1 = vsub.f32 %v2824_v6, %v2843_v30 }
 0x231   : > { %v2232_v55 = vadd.f32 %v2231_v12, %v2208_v32  ;;  %v2845_v12 = vand.u32 4294901760, %v2822_v34 }
 0x233   : > { %v2256_v43 = vadd.f32 %v2255_v4, %v2232_v55  ;;  %v2872_v55 = vand.u32 4294901760, %v2871_v1 }
 0x235   : > { %v2280_v14 = vadd.f32 %v2279_v23, %v2256_v43  ;;  %v2877_v23 = vsub.f32 %v2822_v34, %v2845_v12  ;;  %v2873_v13 = vsub.f32 %v2871_v1, %v2872_v55 }
 0x236   : > { %v2301_v59 = vpop.f32.mrf.mxu1 }
 0x237   : > { %v2302_v46 = vadd.f32 %v2301_v59, %v2280_v14  ;;  %v2878_v14 = vand.u32 4294901760, %v2877_v23  ;;  %v2874_v31 = vand.u32 4294901760, %v2873_v13 }
 0x239   : > { %v2304_v29 = vsub.f32 0.0, %v2302_v46  ;;  %v2879_v46 = vsub.f32 %v2877_v23, %v2878_v14 }
 0x23b   : > { %v2305_v5 = vmul.f32 1.442695, %v2304_v29  ;;  %v2880_v38 = vand.u32 4294901760, %v2879_v46 }
 0x23d   : > { %3292 = vpow2.f32 %v2305_v5 }
 0x243   : > { %v3293_v2 = vpop.eup %3292 }
 0x244   : > { %v2307_v37 = vadd.f32 1.0, %v3293_v2 }
 0x246   : > { %3294 = vrcp.f32 %v2307_v37  ;;  %v2319_v48 = vand.u32 2147483648, %v2307_v37  ;;  %v2317_v17 = vand.u32 2147483647, %v2307_v37  ;;  %vm2313_vm4 = vweird.f32 %v2307_v37 }
 0x248   : > { %v2320_v11 = vor.u32 1.1754944e-38, %v2319_v48  ;;  %vm2318_vm7 = vcmp.eq.f32.partialorder %v2317_v17, 8.507059e+37 }
 0x24c   : > { %v3295_v9 = vpop.eup %3294 }
 0x24d   : > { %v2309_v54 = vmul.f32 %v3295_v9, %v2307_v37  ;;  %vm2314_vm3 = vweird.f32 %v3295_v9 }
 0x24e   : > { %vm2315_vm5 = vmor %vm2313_vm4, %vm2314_vm3 }
 0x24f   : > { %v2310_v44 = vsub.f32 1.0, %v2309_v54 }
 0x251   : > { %v2311_v26 = vmul.f32 %v3295_v9, %v2310_v44 }
 0x253   : > { %v2312_v42 = vadd.f32 %v3295_v9, %v2311_v26 }
 0x255   : > { %v2316_v16 = vsel %vm2315_vm5, %v3295_v9, %v2312_v42 }
 0x256   : > { %v2321_v8 = vsel %vm2318_vm7, %v2320_v11, %v2316_v16 }
 0x257   : > { %v2502_v58 = vsel %vm2500_vm6, %v2321_v8, 0 }
 0x258   : > { %v2522_v60 = vand.u32 4294901760, %v2502_v58 }
 0x25a   : > { %2558 = vmatmul.f32.vlgmr.msra.gmra.mxu1 %v2522_v60  ;;  %v2523_v27 = vsub.f32 %v2502_v58, %v2522_v60 }
 0x25b   : > { %2762 = vmatpush.msra.mxu1 %v2677_v21 }
 0x25c   : > { %2584 = vmatmul.f32.vlgmr.msra.gmra.mxu2 %v2523_v27  ;;  %v2524_v33 = vand.u32 4294901760, %v2523_v27 }
 0x25d   : > { %2764 = vmatpush.msra.mxu1 %v2679_v63  ;;  %2789 = vmatpush.msra.mxu2 %v2706_v52 }
 0x25e   : > { %2609 = vmatmul.f32.vlgmr.msra.gmra.mxu3 %v2524_v33  ;;  %v2525_v62 = vsub.f32 %v2523_v27, %v2524_v33 }
 0x25f   : > { %2793 = vmatpush.msra.mxu2 %v2712_v39  ;;  %2814 = vmatpush.msra.mxu3 %v2677_v21  ;;  %v3037_v21 = vand.u32 4294901760, %v3036_v56 }
 0x260   : > { %v2526_v22 = vand.u32 4294901760, %v2525_v62 }
 0x261   : > { %2816 = vmatpush.msra.mxu3 %v2679_v63  ;;  %v3038_v47 = vsub.f32 %v3036_v56, %v3037_v21 }
 0x262   : > { %2527 = vmatmul.f32.vlgmr.msra.gmra.mxu0 %v2526_v22  ;;  %2659 = vmatmul.f32.vlgmr.msrb.gmra.mxu1 %v2522_v60 }
 0x263   : > { %2737 = vmatpush.msra.mxu0 %v2705_v53  ;;  %2875 = vmatpush.msrb.mxu1 %v2874_v31  ;;  %v3033_v53 = vand.u32 4294901760, %v3032_v57  ;;  %v3039_v52 = vand.u32 4294901760, %v3038_v47 }
 0x264   : > { %2686 = vmatmul.f32.vlgmr.msrb.gmra.mxu2 %v2526_v22 }
 0x265   : > { %2740 = vmatpush.msra.mxu0 %v2711_v24  ;;  %2903 = vmatpush.msrb.mxu2 %v2871_v1 }
 0x266   : > { %2717 = vmatmul.f32.vlgmr.msrb.gmra.mxu3 %v2522_v60  ;;  %2881 = vmatpush.msrb.mxu1 %v2880_v38 }
 0x267   : > { %2928 = vmatpush.msrb.mxu3 %v2843_v30  ;;  %2906 = vmatpush.msrb.mxu2 %v2877_v23 }
 0x269   : > { %2930 = vmatpush.msrb.mxu3 %v2845_v12 }
 0x26a   : > { %2636 = vmatmul.f32.vlgmr.msrb.gmra.mxu0 %v2522_v60  ;;  %2768 = vmatmul.f32.vlgmr.msra.gmra.mxu1 %v2524_v33 }
 0x26b   : > { %2844 = vmatpush.msrb.mxu0 %v2843_v30  ;;  %2980 = vmatpush.msra.mxu1 %v2843_v30 }
 0x26c   : > { %2795 = vmatmul.f32.vlgmr.msra.gmra.mxu2 %v2522_v60 }
 0x26d   : > { %2846 = vmatpush.msrb.mxu0 %v2845_v12  ;;  %3003 = vmatpush.msra.mxu2 %v3002_v10 }
 0x26e   : > { %2818 = vmatmul.f32.vlgmr.msra.gmra.mxu3 %v2522_v60  ;;  %2982 = vmatpush.msra.mxu1 %v2845_v12 }
 0x26f   : > { %3005 = vmatpush.msra.mxu2 %v3004_v18  ;;  %3034 = vmatpush.msra.mxu3 %v3033_v53 }
 0x271   : > { %3040 = vmatpush.msra.mxu3 %v3039_v52  ;;  %v4913_v52 = vld [vmem:[#allocation5_spill] sm:$0xff] }
 0x272   : > { %2743 = vmatmul.f32.vlgmr.msra.gmra.mxu0 %v2523_v27 }
 0x273   : > { %2955 = vmatpush.msra.mxu0 %v2872_v55 }
 0x275   : > { %2959 = vmatpush.msra.mxu0 %v2878_v14 }
 0x290   : > { %v2428_v35 = vpop.f32.mrf.mxu1 }
 0x292   : > { %v2404_v0 = vpop.f32.mrf.mxu0 }
 0x296   : > { %v2354_v19 = vpop.f32.mrf.mxu2 }
 0x297   : > { %v2355_v51 = vadd.f32 %v2354_v19, %v2326_v7 }
 0x29e   : > { %v2380_v40 = vpop.f32.mrf.mxu3  ;;  %v2452_v4 = vpop.f32.mrf.mxu2 }
 0x29f   : > { %v2381_v20 = vadd.f32 %v2380_v40, %v2355_v51 }
 0x2a1   : > { %v2405_v32 = vadd.f32 %v2404_v0, %v2381_v20 }
 0x2a3   : > { %v2429_v43 = vadd.f32 %v2428_v35, %v2405_v32 }
 0x2a5   : > { %v2453_v41 = vadd.f32 %v2452_v4, %v2429_v43 }
 0x2a6   : > { %v2474_v59 = vpop.f32.mrf.mxu3 }
 0x2a7   : > { %v2475_v49 = vadd.f32 %v2474_v59, %v2453_v41 }
 0x2a9   : > { %v2477_v29 = vsub.f32 0.0, %v2475_v49 }
 0x2ab   : > { %v2478_v5 = vmul.f32 1.442695, %v2477_v29 }
 0x2ad   : > { %3296 = vpow2.f32 %v2478_v5 }
 0x2b3   : > { %v3297_v2 = vpop.eup %3296 }
 0x2b4   : > { %v2480_v63 = vadd.f32 1.0, %v3297_v2 }
 0x2b6   : > { %3298 = vrcp.f32 %v2480_v63  ;;  %v2492_v28 = vand.u32 2147483648, %v2480_v63  ;;  %v2490_v36 = vand.u32 2147483647, %v2480_v63  ;;  %vm2486_vm9 = vweird.f32 %v2480_v63 }
 0x2b8   : > { %v2493_v9 = vor.u32 1.1754944e-38, %v2492_v28  ;;  %vm2491_vm11 = vcmp.eq.f32.partialorder %v2490_v36, 8.507059e+37 }
 0x2bc   : > { %v3299_v37 = vpop.eup %3298 }
 0x2bd   : > { %v2482_v45 = vmul.f32 %v3299_v37, %v2480_v63  ;;  %vm2487_vm8 = vweird.f32 %v3299_v37 }
 0x2be   : > { %vm2488_vm10 = vmor %vm2486_vm9, %vm2487_vm8 }
 0x2bf   : > { %v2483_v24 = vsub.f32 1.0, %v2482_v45 }
 0x2c1   : > { %v2484_v39 = vmul.f32 %v3299_v37, %v2483_v24 }
 0x2c3   : > { %v2485_v3 = vadd.f32 %v3299_v37, %v2484_v39 }
 0x2c5   : > { %v2489_v54 = vsel %vm2488_vm10, %v3299_v37, %v2485_v3 }
 0x2c6   : > { %v2494_v44 = vsel %vm2491_vm11, %v2493_v9, %v2489_v54 }
 0x2c7   : > { %v2827_v48 = vsel %vm2500_vm6, %v2494_v44, 0 }
 0x2c8   : > { %v2847_v26 = vand.u32 4294901760, %v2827_v48 }
 0x2ca   : > { %2883 = vmatmul.f32.vlgmr.msrb.gmra.mxu1 %v2847_v26  ;;  %v2848_v17 = vsub.f32 %v2827_v48, %v2847_v26 }
 0x2cb   : > { %3087 = vmatpush.msrb.mxu1 %v3002_v10 }
 0x2cc   : > { %2909 = vmatmul.f32.vlgmr.msrb.gmra.mxu2 %v2848_v17  ;;  %v2849_v42 = vand.u32 4294901760, %v2848_v17 }
 0x2cd   : > { %3089 = vmatpush.msrb.mxu1 %v3004_v18  ;;  %3114 = vmatpush.msrb.mxu2 %v3031_v61 }
 0x2ce   : > { %2934 = vmatmul.f32.vlgmr.msrb.gmra.mxu3 %v2849_v42  ;;  %v2850_v11 = vsub.f32 %v2848_v17, %v2849_v42 }
 0x2cf   : > { %3118 = vmatpush.msrb.mxu2 %v3037_v21  ;;  %3139 = vmatpush.msrb.mxu3 %v3002_v10 }
 0x2d0   : > { %v2851_v16 = vand.u32 4294901760, %v2850_v11 }
 0x2d1   : > { %3141 = vmatpush.msrb.mxu3 %v3004_v18 }
 0x2d2   : > { %2852 = vmatmul.f32.vlgmr.msrb.gmra.mxu0 %v2851_v16  ;;  %2984 = vmatmul.f32.vlgmr.msra.gmra.mxu1 %v2847_v26 }
 0x2d3   : > { %3062 = vmatpush.msrb.mxu0 %v3030_v15 }
 0x2d4   : > { %3011 = vmatmul.f32.vlgmr.msra.gmra.mxu2 %v2851_v16 }
 0x2d5   : > { %3065 = vmatpush.msrb.mxu0 %v3036_v56 }
 0x2d6   : > { %3042 = vmatmul.f32.vlgmr.msra.gmra.mxu3 %v2847_v26 }
 0x2d7   : > { %v2559_v8 = vpop.f32.mrf.mxu1 }
 0x2da   : > { %2961 = vmatmul.f32.vlgmr.msra.gmra.mxu0 %v2847_v26  ;;  %3093 = vmatmul.f32.vlgmr.msrb.gmra.mxu1 %v2849_v42 }
 0x2dc   : > { %3120 = vmatmul.f32.vlgmr.msrb.gmra.mxu2 %v2847_v26 }
 0x2de   : > { %3143 = vmatmul.f32.vlgmr.msrb.gmra.mxu3 %v2847_v26 }
 0x2df   : > { %v2528_v58 = vpop.f32.mrf.mxu0  ;;  %v2585_v60 = vpop.f32.mrf.mxu2 }
 0x2e0   : > { %v2660_v33 = vpop.f32.mrf.mxu1  ;;  %v2560_v12 = vadd.f32 %v2559_v8, %v2528_v58 }
 0x2e1   : > { %v2610_v27 = vpop.f32.mrf.mxu3 }
 0x2e2   : > { %3068 = vmatmul.f32.vlgmr.msrb.gmra.mxu0 %v2848_v17  ;;  %v2586_v43 = vadd.f32 %v2585_v60, %v2560_v12 }
 0x2e4   : > { %v2611_v59 = vadd.f32 %v2610_v27, %v2586_v43 }
 0x2e7   : > { %v2637_v62 = vpop.f32.mrf.mxu0  ;;  %v2687_v22 = vpop.f32.mrf.mxu2 }
 0x2e8   : > { %v2769_v19 = vpop.f32.mrf.mxu1  ;;  %v2638_v29 = vadd.f32 %v2637_v62, %v2611_v59 }
 0x2e9   : > { %v2718_v7 = vpop.f32.mrf.mxu3 }
 0x2ea   : > { %v2719_v34 = vadd.f32 %v2718_v7, %v2687_v22  ;;  %v2661_v61 = vadd.f32 %v2660_v33, %v2638_v29 }
 0x2ef   : > { %v2744_v51 = vpop.f32.mrf.mxu0  ;;  %v2796_v6 = vpop.f32.mrf.mxu2 }
 0x2f0   : > { %v2745_v1 = vadd.f32 %v2744_v51, %v2719_v34 }
 0x2f1   : > { %v2819_v40 = vpop.f32.mrf.mxu3 }
 0x2f2   : > { %v2770_v32 = vadd.f32 %v2769_v19, %v2745_v1 }
 0x2f4   : > { %v2797_v13 = vadd.f32 %v2796_v6, %v2770_v32 }
 0x2f6   : > { %v2820_v31 = vadd.f32 %v2819_v40, %v2797_v13 }
 0x2f8   : > { %v3149_v5 = vrot.slane %v2820_v31, 4 }
 0x2fa   : > { %v3150_v53 = vsel %vm1840_vm1, %v2661_v61, %v3149_v5 }
 0x2fb   : > { %v3152_v37 = vmul.f32 %v3150_v53, %v4913_v52 }
 0x347   : > { %v2884_v0 = vpop.f32.mrf.mxu1 }
 0x34f   : > { %v2853_v30 = vpop.f32.mrf.mxu0  ;;  %v2910_v20 = vpop.f32.mrf.mxu2 }
 0x350   : > { %v2985_v4 = vpop.f32.mrf.mxu1  ;;  %v2885_v14 = vadd.f32 %v2884_v0, %v2853_v30 }
 0x351   : > { %v2935_v35 = vpop.f32.mrf.mxu3 }
 0x352   : > { %v2911_v46 = vadd.f32 %v2910_v20, %v2885_v14 }
 0x354   : > { %v2936_v25 = vadd.f32 %v2935_v35, %v2911_v46 }
 0x357   : > { %v2962_v55 = vpop.f32.mrf.mxu0  ;;  %v3012_v23 = vpop.f32.mrf.mxu2 }
 0x358   : > { %v3094_v10 = vpop.f32.mrf.mxu1  ;;  %v2963_v56 = vadd.f32 %v2962_v55, %v2936_v25 }
 0x359   : > { %v3043_v41 = vpop.f32.mrf.mxu3 }
 0x35a   : > { %v3044_v49 = vadd.f32 %v3043_v41, %v3012_v23  ;;  %v2986_v2 = vadd.f32 %v2985_v4, %v2963_v56 }
 0x35f   : > { %v3069_v38 = vpop.f32.mrf.mxu0  ;;  %v3121_v18 = vpop.f32.mrf.mxu2 }
 0x360   : > { %v3070_v50 = vadd.f32 %v3069_v38, %v3044_v49 }
 0x361   : > { %v3144_v21 = vpop.f32.mrf.mxu3 }
 0x362   : > { %v3095_v15 = vadd.f32 %v3094_v10, %v3070_v50 }
 0x364   : > { %v3122_v57 = vadd.f32 %v3121_v18, %v3095_v15 }
 0x366   : > { %v3145_v47 = vadd.f32 %v3144_v21, %v3122_v57 }
 0x368   : > { %v3155_v63 = vrot.slane %v3145_v47, 4 }
 0x36a   : > { %v3156_v45 = vsel %vm1840_vm1, %v2986_v2, %v3155_v63 }
 0x36b   : > { %v3158_v24 = vmul.f32 %v3156_v45, %v3152_v37 }
 0x36d   : > { %3159 = vst [vmem:[%s379_s22] sm:$0xff] %v3158_v24 }
 0x36e   : > { %3327 = shalt.err (!%p3324_p3)
}
 0x36f   : > { %3250 = dma.vmem_to_hbm [thread:$0]  (%p3463_p5), %s3175_s24, 128, %s3177_s25, %s3161_s21  }
 0x370 PF: > { %p3256_p4 = scmp.ge.s32.totalorder %s3362_s20, 2  ;;  %s3188_s30 = sand.u32 1, %s3350_s17  }
 0x371   : > { %s3189_s22 = scalar_lea.sflag [#allocation3], %s3188_s30 }
 0x372   : > { %p3253_p7 = pnand %p3256_p4, %p3467_p6 }
 0x374   : > { %p3254_p8 = pneg %p3253_p7 }
 0x376   : > { %3345 = dma.done.wait (%p3254_p8), %s3189_s22, 128  }
 0x377   : > { %3347 = vsyncadd (%p3254_p8), %s3189_s22, 4294967168  ;;  %p21_p9 = scmp.ge.s32.totalorder %s3450_s23, 4   ;;  %s4914_s17 = smov %s3354_s18 }
 0x378   : > { %s4915_s18 = smov %s3358_s19  ;;  %s4916_s19 = smov %s3461_s26 }
 0x379   : > { %s4917_s20 = smov %s3450_s23  ;;  %23 = sbr.rel (!%p21_p9) target bundleno = 5 (0x5), region = 99 }
 0x37e   :  { %3195 = vsyncpa [#allocation3], 1 }
 0x37f   :  { %3197 = vsyncpa [#allocation3 + $0x1], 1 }

</bundles_post_ra>
